<compile_context>
chip_gen: v7x
topology: tpu7x:2x2x1
jax: 0.10.0
libtpu: 0.0.40
codegen_flags: <defaults>
</compile_context>

<pallas_src>
import functools

import jax
import jax.numpy as jnp
from jax import lax
from jax.experimental import pallas as pl
from jax.experimental.pallas import tpu as pltpu


# MXU compute dtype (f32 accumulation everywhere via preferred_element_type).
MM_DTYPE = jnp.bfloat16


# ----------------------------- in-kernel helpers -----------------------------

def _layer_norm(x, g, b, eps=1e-5):
    mu = jnp.mean(x, axis=-1, keepdims=True)
    var = jnp.mean((x - mu) ** 2, axis=-1, keepdims=True)
    return (x - mu) * lax.rsqrt(var + eps) * g + b


def _gelu(x):
    # tanh-form GELU (single EUP tanh instead of ~10 VALU ops).
    c = 0.7978845608028654  # sqrt(2/pi)
    return 0.5 * x * (1.0 + jnp.tanh(c * (x + 0.044715 * x * x * x)))


# --------------------------------- fused kernel --------------------------------

def vit_fused_kernel(num_head, head_dim,
                     patches_ref, vecp_ref, wpe_ref, vecd_ref, epos_ref,
                     wh_ref, bh_ref,
                     vec_ref, wqkv_ref, bqkv_ref, wo_ref, w1_ref, b1_ref, w2_ref,
                     out_ref, act_ref, sa_ref):
    """Whole VitNet forward for one batch block.

    grid = (batch_blocks, num_layers); layer axis is "arbitrary" (carried).
    act_ref: (Bblk, S, D) f32 VMEM scratch -- resident activation across layers.
    sa_ref:  (Bblk*S, HD) f32 VMEM scratch -- concat-heads attention output.

    vecp rows: 0=patch-LN gamma, 1=patch-LN beta.
    vecd rows: 0=post-proj LN gamma, 1=beta, 2=proj bias, 3=cls token (X_zero).
    vec  rows: 0=ln1_g, 1=ln1_b, 2=ln2_g, 3=ln2_b, 4=attn-out bias, 5=mlp-2 bias.
    """
    layer = pl.program_id(1)
    n_layers = pl.num_programs(1)

    Bblk, N, P = patches_ref.shape
    D = wpe_ref.shape[1]
    S = N + 1
    HD = num_head * head_dim

    # ---- layer 0 of each batch block: patch embed -> cls token -> + pos-emb
    @pl.when(layer == 0)
    def _():
        x2 = patches_ref[...].reshape(Bblk * N, P)
        xn = _layer_norm(x2, vecp_ref[0:1, :], vecp_ref[1:2, :])
        y = jnp.dot(xn.astype(MM_DTYPE), wpe_ref[...],
                    preferred_element_type=jnp.float32) + vecd_ref[2:3, :]
        y = _layer_norm(y, vecd_ref[0:1, :], vecd_ref[1:2, :])
        epos = epos_ref[...]                                   # (S, D)
        act_ref[:, 0:N, :] = y.reshape(Bblk, N, D) + epos[0:N][None]
        cls = vecd_ref[3:4, :] + epos[N:N + 1, :]              # (1, D)
        act_ref[:, N:N + 1, :] = jnp.broadcast_to(cls[None], (Bblk, 1, D))

    # ---- one transformer encoder block on the resident activation
    x2 = act_ref[...].reshape(Bblk * S, D)

    ln1_g, ln1_b = vec_ref[0:1, :], vec_ref[1:2, :]
    ln2_g, ln2_b = vec_ref[2:3, :], vec_ref[3:4, :]
    bo, b2 = vec_ref[4:5, :], vec_ref[5:6, :]

    # attention_block = LayerNorm -> MultiHeadAttention (fused QKV matmul)
    xn = _layer_norm(x2, ln1_g, ln1_b).astype(MM_DTYPE)
    qkv = jnp.dot(xn, wqkv_ref[...],
                  preferred_element_type=jnp.float32) + bqkv_ref[...]
    qkv = qkv.reshape(Bblk, S, 3 * HD).astype(MM_DTYPE)

    scale = head_dim ** (-0.5)
    for h in range(num_head):                     # static unroll over heads
        q_h = qkv[:, :, h * head_dim:(h + 1) * head_dim]
        k_h = qkv[:, :, HD + h * head_dim:HD + (h + 1) * head_dim]
        v_h = qkv[:, :, 2 * HD + h * head_dim:2 * HD + (h + 1) * head_dim]

        s = jnp.einsum('bqd,bkd->bqk', q_h, k_h,
                       preferred_element_type=jnp.float32) * scale
        s = s - jnp.max(s, axis=-1, keepdims=True)     # stable softmax (equiv.)
        p = jnp.exp(s)
        a = p * pl.reciprocal(jnp.sum(p, axis=-1, keepdims=True), approx=True)
        sa = jnp.einsum('bqk,bkd->bqd', a.astype(MM_DTYPE), v_h,
                        preferred_element_type=jnp.float32)
        # concat-heads into the lane slice of the VMEM scratch
        sa_ref[:, h * head_dim:(h + 1) * head_dim] = sa.reshape(Bblk * S, head_dim)

    # single full-K output projection: concat(heads) @ Wo
    attn = jnp.dot(sa_ref[...].astype(MM_DTYPE), wo_ref[...],
                   preferred_element_type=jnp.float32) + bo

    res = x2 + attn                                        # residual 1

    # mlp_block = LayerNorm -> Linear -> GELU -> Linear
    rn = _layer_norm(res, ln2_g, ln2_b).astype(MM_DTYPE)
    h1 = _gelu(jnp.dot(rn, w1_ref[...],
                       preferred_element_type=jnp.float32) + b1_ref[...])
    h2 = jnp.dot(h1.astype(MM_DTYPE), w2_ref[...],
                 preferred_element_type=jnp.float32) + b2

    new = res + h2                                         # residual 2
    act_ref[...] = new.reshape(Bblk, S, D)

    # ---- last layer: mean-pool over tokens + classifier head (128-lane padded)
    @pl.when(layer == n_layers - 1)
    def _():
        m = jnp.mean(new.reshape(Bblk, S, D), axis=1, keepdims=True)
        m = m.reshape(Bblk, D)
        out_ref[...] = jnp.dot(m.astype(MM_DTYPE), wh_ref[...],
                               preferred_element_type=jnp.float32) + bh_ref[...]


# ------------------------------ pallas wrapper ---------------------------------

def vitnet_forward(x_nchw, params, *, patch_size, num_head, head_channel,
                   batch_block=1):
    B, C, H, W = x_nchw.shape
    p1, p2 = patch_size
    Hp, Wp = H // p1, W // p2
    N = Hp * Wp
    P = p1 * p2 * C

    # einops: 'b c (h p1) (w p2) -> b (h w) (p1 p2 c)'  (pure layout glue)
    patches = x_nchw.reshape(B, C, Hp, p1, Wp, p2)
    patches = patches.transpose(0, 2, 4, 3, 5, 1).reshape(B, N, P)

    pe, ly, hd = params["proj"], params["layers"], params["head"]
    D = pe["w"].shape[1]
    S = N + 1
    L = ly["w_qkv"].shape[0]
    HD = num_head * head_channel
    MLP = ly["w1"].shape[2]
    Cp = hd["w"].shape[1]

    assert B % batch_block == 0
    nb = B // batch_block

    kernel = functools.partial(vit_fused_kernel, num_head, head_channel)

    out = pl.pallas_call(
        kernel,
        out_shape=jax.ShapeDtypeStruct((nb, batch_block, Cp), jnp.float32),
        grid=(nb, L),
        in_specs=[
            # per-batch-block input patches
            pl.BlockSpec((batch_block, N, P), lambda b, l: (b, 0, 0)),
            # patch-embed + pos-emb + head params (constant index -> loaded once)
            pl.BlockSpec((8, P), lambda b, l: (0, 0)),
            pl.BlockSpec((P, D), lambda b, l: (0, 0)),
            pl.BlockSpec((8, D), lambda b, l: (0, 0)),
            pl.BlockSpec((S, D), lambda b, l: (0, 0)),
            pl.BlockSpec((D, Cp), lambda b, l: (0, 0)),
            pl.BlockSpec((1, Cp), lambda b, l: (0, 0)),
            # per-layer weights, pipelined along the "arbitrary" layer axis
            pl.BlockSpec((None, 8, D), lambda b, l: (l, 0, 0)),
            pl.BlockSpec((None, D, 3 * HD), lambda b, l: (l, 0, 0)),
            pl.BlockSpec((None, 1, 3 * HD), lambda b, l: (l, 0, 0)),
            pl.BlockSpec((None, HD, D), lambda b, l: (l, 0, 0)),
            pl.BlockSpec((None, D, MLP), lambda b, l: (l, 0, 0)),
            pl.BlockSpec((None, 1, MLP), lambda b, l: (l, 0, 0)),
            pl.BlockSpec((None, MLP, D), lambda b, l: (l, 0, 0)),
        ],
        out_specs=pl.BlockSpec((None, batch_block, Cp), lambda b, l: (b, 0, 0)),
        scratch_shapes=[
            pltpu.VMEM((batch_block, S, D), jnp.float32),       # resident activation
            pltpu.VMEM((batch_block * S, HD), jnp.float32),     # concat-heads buffer
        ],
        compiler_params=pltpu.CompilerParams(
            dimension_semantics=("parallel", "arbitrary"),
            vmem_limit_bytes=32 * 1024 * 1024,
        ),
    )(patches, pe["vec_p"], pe["w"], pe["vec_d"], pe["e_pos"],
      hd["w"], hd["b"],
      ly["vec"], ly["w_qkv"], ly["b_qkv"], ly["wo"], ly["w1"], ly["b1"], ly["w2"])

    return out.reshape(B, Cp)[:, :hd["out_channel"]]


# --------------------------------- model params --------------------------------

def init_params(key, *, patch_dim, D, num_layers, MLP_hidden, num_head,
                head_channel, out_channel, N):
    keys = iter(jax.random.split(key, 32 + 8 * num_layers))

    def dense(kin, kout):
        w = jax.random.normal(next(keys), (kin, kout), jnp.float32) * 0.02
        b = jnp.zeros((1, kout), jnp.float32)
        return w, b

    params = {}

    # patch embedding: LN(P) -> Linear(P, D) -> LN(D), plus cls token & pos-emb
    w_pe, b_pe = dense(patch_dim, D)
    vec_p = jnp.zeros((8, patch_dim), jnp.float32).at[0].set(1.0)   # LN g=1, b=0
    x_zero = jax.random.normal(next(keys), (D,), jnp.float32)
    vec_d = jnp.zeros((8, D), jnp.float32)
    vec_d = vec_d.at[0].set(1.0)          # post-proj LN gamma (row 1 = beta = 0)
    vec_d = vec_d.at[2].set(b_pe[0])      # projection bias
    vec_d = vec_d.at[3].set(x_zero)       # cls token
    e_pos = jax.random.normal(next(keys), (N + 1, D), jnp.float32)
    params["proj"] = dict(vec_p=vec_p, w=w_pe.astype(MM_DTYPE),
                          vec_d=vec_d, e_pos=e_pos)

    # encoder layers, stacked along a leading L axis
    HD = num_head * head_channel
    vec_l, wqkv_l, bqkv_l, wo_l, w1_l, b1_l, w2_l = [], [], [], [], [], [], []
    for _ in range(num_layers):
        wq, bq = dense(D, HD)
        wk, bk = dense(D, HD)
        wv, bv = dense(D, HD)
        wo, bo = dense(HD, D)
        w1, b1 = dense(D, MLP_hidden)
        w2, b2 = dense(MLP_hidden, D)
        vec = jnp.zeros((8, D), jnp.float32)
        vec = vec.at[0].set(1.0)          # ln1 gamma
        vec = vec.at[2].set(1.0)          # ln2 gamma
        vec = vec.at[4].set(bo[0])        # attention out-proj bias
        vec = vec.at[5].set(b2[0])        # mlp second bias
        vec_l.append(vec)
        wqkv_l.append(jnp.concatenate([wq, wk, wv], axis=1))    # (D, 3HD)
        bqkv_l.append(jnp.concatenate([bq, bk, bv], axis=1))    # (1, 3HD)
        wo_l.append(wo)
        w1_l.append(w1)
        b1_l.append(b1)
        w2_l.append(w2)
    params["layers"] = dict(
        vec=jnp.stack(vec_l),                            # (L, 8, D)    f32
        w_qkv=jnp.stack(wqkv_l).astype(MM_DTYPE),        # (L, D, 3HD)  bf16
        b_qkv=jnp.stack(bqkv_l),                         # (L, 1, 3HD)  f32
        wo=jnp.stack(wo_l).astype(MM_DTYPE),             # (L, HD, D)   bf16
        w1=jnp.stack(w1_l).astype(MM_DTYPE),             # (L, D, MLP)  bf16
        b1=jnp.stack(b1_l),                              # (L, 1, MLP)  f32
        w2=jnp.stack(w2_l).astype(MM_DTYPE),             # (L, MLP, D)  bf16
    )

    # classifier head, zero-padded to 128 lanes (lane-dense output store)
    wh, bh = dense(D, out_channel)
    Cp = ((out_channel + 127) // 128) * 128
    w_pad = jnp.zeros((D, Cp), jnp.float32).at[:, :out_channel].set(wh)
    b_pad = jnp.zeros((1, Cp), jnp.float32).at[:, :out_channel].set(bh)
    params["head"] = dict(w=w_pad.astype(MM_DTYPE), b=b_pad,
                          out_channel=out_channel)
    return params


# ------------------------------------ main --------------------------------------

if __name__ == "__main__":
    key = jax.random.PRNGKey(0)
    kx, kp = jax.random.split(key)

    # small but consistent shapes: 16x16 RGB image, 8x8 patches -> N = 4 patches
    B, C, H, W = 2, 3, 16, 16
    p1 = p2 = 8
    N = (H // p1) ** 2
    D = 32
    num_layers = 2
    MLP_hidden = 32
    num_head = 2
    head_channel = 16
    out_channel = 10

    x = jax.random.normal(kx, (B, C, H, W), jnp.float32)
    params = init_params(kp, patch_dim=p1 * p2 * C, D=D, num_layers=num_layers,
                         MLP_hidden=MLP_hidden, num_head=num_head,
                         head_channel=head_channel, out_channel=out_channel, N=N)

    out = vitnet_forward(x, params, patch_size=(p1, p2),
                         num_head=num_head, head_channel=head_channel,
                         batch_block=1)
    jax.block_until_ready(out)
    assert out.shape == (B, out_channel), out.shape
    assert bool(jnp.all(jnp.isfinite(out)))
    print("KERNEL_OK")
</pallas_src>

<mosaic_0001>
module attributes {stable_mosaic.version = 11 : i64} {
  func.func @vit_fused_kernel(%arg0: i32, %arg1: i32, %arg2: memref<1x4x192xf32, #tpu.memory_space<vmem>>, %arg3: memref<8x192xf32, #tpu.memory_space<vmem>>, %arg4: memref<192x32xbf16, #tpu.memory_space<vmem>>, %arg5: memref<8x32xf32, #tpu.memory_space<vmem>>, %arg6: memref<5x32xf32, #tpu.memory_space<vmem>>, %arg7: memref<32x128xbf16, #tpu.memory_space<vmem>>, %arg8: memref<1x128xf32, #tpu.memory_space<vmem>>, %arg9: memref<1x8x32xf32, #tpu.memory_space<vmem>>, %arg10: memref<1x32x96xbf16, #tpu.memory_space<vmem>>, %arg11: memref<1x1x96xf32, #tpu.memory_space<vmem>>, %arg12: memref<1x32x32xbf16, #tpu.memory_space<vmem>>, %arg13: memref<1x32x32xbf16, #tpu.memory_space<vmem>>, %arg14: memref<1x1x32xf32, #tpu.memory_space<vmem>>, %arg15: memref<1x32x32xbf16, #tpu.memory_space<vmem>>, %arg16: memref<1x1x128xf32, #tpu.memory_space<vmem>>, %arg17: memref<1x5x32xf32, #tpu.memory_space<vmem>>, %arg18: memref<5x32xf32, #tpu.memory_space<vmem>>) attributes {dimension_semantics = [#tpu.dimension_semantics<parallel>, #tpu.dimension_semantics<arbitrary>], iteration_bounds = array<i64: 2, 2>, scalar_prefetch = 0 : i64, scratch_operands = 2 : i64, tpu.core_type = #tpu.core_type<tc>, window_params = [{transform_indices = @transform_0, window_bounds = array<i64: 1, 4, 192>}, {pipeline_mode = #tpu.pipeline_mode<synchronous>, transform_indices = @transform_1, window_bounds = array<i64: 8, 192>}, {pipeline_mode = #tpu.pipeline_mode<synchronous>, transform_indices = @transform_2, window_bounds = array<i64: 192, 32>}, {pipeline_mode = #tpu.pipeline_mode<synchronous>, transform_indices = @transform_3, window_bounds = array<i64: 8, 32>}, {pipeline_mode = #tpu.pipeline_mode<synchronous>, transform_indices = @transform_4, window_bounds = array<i64: 5, 32>}, {pipeline_mode = #tpu.pipeline_mode<synchronous>, transform_indices = @transform_5, window_bounds = array<i64: 32, 128>}, {pipeline_mode = #tpu.pipeline_mode<synchronous>, transform_indices = @transform_6, window_bounds = array<i64: 1, 128>}, {transform_indices = @transform_7, window_bounds = array<i64: 1, 8, 32>}, {transform_indices = @transform_8, window_bounds = array<i64: 1, 32, 96>}, {transform_indices = @transform_9, window_bounds = array<i64: 1, 1, 96>}, {transform_indices = @transform_10, window_bounds = array<i64: 1, 32, 32>}, {transform_indices = @transform_11, window_bounds = array<i64: 1, 32, 32>}, {transform_indices = @transform_12, window_bounds = array<i64: 1, 1, 32>}, {transform_indices = @transform_13, window_bounds = array<i64: 1, 32, 32>}, {transform_indices = @transform_14, window_bounds = array<i64: 1, 1, 128>}]} {
    %c0_i32 = arith.constant 0 : i32
    %0 = arith.cmpi eq, %arg1, %c0_i32 : i32
    %1 = arith.extui %0 : i1 to i32
    %c0_i32_0 = arith.constant 0 : i32
    %2 = arith.cmpi ne, %1, %c0_i32_0 : i32
    scf.if %2 {
      %c0_70 = arith.constant 0 : index
      %c0_71 = arith.constant 0 : index
      %c0_72 = arith.constant 0 : index
      %152 = vector.load %arg2[%c0_70, %c0_71, %c0_72] : memref<1x4x192xf32, #tpu.memory_space<vmem>>, vector<1x4x192xf32>
      %153 = vector.shape_cast %152 : vector<1x4x192xf32> to vector<4x192xf32>
      %c0_73 = arith.constant 0 : index
      %c0_74 = arith.constant 0 : index
      %154 = vector.load %arg3[%c0_73, %c0_74] : memref<8x192xf32, #tpu.memory_space<vmem>>, vector<1x192xf32>
      %c1_75 = arith.constant 1 : index
      %c0_76 = arith.constant 0 : index
      %155 = vector.load %arg3[%c1_75, %c0_76] : memref<8x192xf32, #tpu.memory_space<vmem>>, vector<1x192xf32>
      %cst_77 = arith.constant dense<0.000000e+00> : vector<4xf32>
      %156 = vector.multi_reduction <add>, %153, %cst_77 [1] : vector<4x192xf32> to vector<4xf32>
      %157 = vector.shape_cast %156 : vector<4xf32> to vector<4x1xf32>
      %cst_78 = arith.constant 1.920000e+02 : f32
      %158 = vector.broadcast %cst_78 : f32 to vector<4x1xf32>
      %159 = arith.divf %157, %158 : vector<4x1xf32>
      %160 = vector.broadcast %159 : vector<4x1xf32> to vector<4x192xf32>
      %161 = arith.subf %153, %160 : vector<4x192xf32>
      %162 = arith.mulf %161, %161 : vector<4x192xf32>
      %cst_79 = arith.constant dense<0.000000e+00> : vector<4xf32>
      %163 = vector.multi_reduction <add>, %162, %cst_79 [1] : vector<4x192xf32> to vector<4xf32>
      %164 = vector.shape_cast %163 : vector<4xf32> to vector<4x1xf32>
      %cst_80 = arith.constant 1.920000e+02 : f32
      %165 = vector.broadcast %cst_80 : f32 to vector<4x1xf32>
      %166 = arith.divf %164, %165 : vector<4x1xf32>
      %167 = vector.broadcast %159 : vector<4x1xf32> to vector<4x192xf32>
      %168 = arith.subf %153, %167 : vector<4x192xf32>
      %cst_81 = arith.constant 9.99999974E-6 : f32
      %169 = vector.broadcast %cst_81 : f32 to vector<4x1xf32>
      %170 = arith.addf %166, %169 : vector<4x1xf32>
      %171 = math.rsqrt %170 : vector<4x1xf32>
      %172 = vector.broadcast %171 : vector<4x1xf32> to vector<4x192xf32>
      %173 = arith.mulf %168, %172 : vector<4x192xf32>
      %174 = vector.broadcast %154 : vector<1x192xf32> to vector<4x192xf32>
      %175 = arith.mulf %173, %174 : vector<4x192xf32>
      %176 = vector.broadcast %155 : vector<1x192xf32> to vector<4x192xf32>
      %177 = arith.addf %175, %176 : vector<4x192xf32>
      %178 = arith.truncf %177 : vector<4x192xf32> to vector<4x192xbf16>
      %c0_82 = arith.constant 0 : index
      %c0_83 = arith.constant 0 : index
      %179 = vector.load %arg4[%c0_82, %c0_83] : memref<192x32xbf16, #tpu.memory_space<vmem>>, vector<192x32xbf16>
      %cst_84 = arith.constant dense<0.000000e+00> : vector<4x32xf32>
      %180 = tpu.matmul %178, %179, %cst_84 {dimension_numbers = #tpu.dot_dimension_numbers<[1], [0], [0], [1], [0, 0, 1, 1], [], []>} : vector<4x192xbf16>, vector<192x32xbf16>, vector<4x32xf32> -> vector<4x32xf32>
      %c2_85 = arith.constant 2 : index
      %c0_86 = arith.constant 0 : index
      %181 = vector.load %arg5[%c2_85, %c0_86] : memref<8x32xf32, #tpu.memory_space<vmem>>, vector<1x32xf32>
      %182 = vector.broadcast %181 : vector<1x32xf32> to vector<4x32xf32>
      %183 = arith.addf %180, %182 : vector<4x32xf32>
      %c0_87 = arith.constant 0 : index
      %c0_88 = arith.constant 0 : index
      %184 = vector.load %arg5[%c0_87, %c0_88] : memref<8x32xf32, #tpu.memory_space<vmem>>, vector<1x32xf32>
      %c1_89 = arith.constant 1 : index
      %c0_90 = arith.constant 0 : index
      %185 = vector.load %arg5[%c1_89, %c0_90] : memref<8x32xf32, #tpu.memory_space<vmem>>, vector<1x32xf32>
      %cst_91 = arith.constant dense<0.000000e+00> : vector<4xf32>
      %186 = vector.multi_reduction <add>, %183, %cst_91 [1] : vector<4x32xf32> to vector<4xf32>
      %187 = vector.shape_cast %186 : vector<4xf32> to vector<4x1xf32>
      %cst_92 = arith.constant 3.200000e+01 : f32
      %188 = vector.broadcast %cst_92 : f32 to vector<4x1xf32>
      %189 = arith.divf %187, %188 : vector<4x1xf32>
      %190 = vector.broadcast %189 : vector<4x1xf32> to vector<4x32xf32>
      %191 = arith.subf %183, %190 : vector<4x32xf32>
      %192 = arith.mulf %191, %191 : vector<4x32xf32>
      %cst_93 = arith.constant dense<0.000000e+00> : vector<4xf32>
      %193 = vector.multi_reduction <add>, %192, %cst_93 [1] : vector<4x32xf32> to vector<4xf32>
      %194 = vector.shape_cast %193 : vector<4xf32> to vector<4x1xf32>
      %cst_94 = arith.constant 3.200000e+01 : f32
      %195 = vector.broadcast %cst_94 : f32 to vector<4x1xf32>
      %196 = arith.divf %194, %195 : vector<4x1xf32>
      %197 = vector.broadcast %189 : vector<4x1xf32> to vector<4x32xf32>
      %198 = arith.subf %183, %197 : vector<4x32xf32>
      %cst_95 = arith.constant 9.99999974E-6 : f32
      %199 = vector.broadcast %cst_95 : f32 to vector<4x1xf32>
      %200 = arith.addf %196, %199 : vector<4x1xf32>
      %201 = math.rsqrt %200 : vector<4x1xf32>
      %202 = vector.broadcast %201 : vector<4x1xf32> to vector<4x32xf32>
      %203 = arith.mulf %198, %202 : vector<4x32xf32>
      %204 = vector.broadcast %184 : vector<1x32xf32> to vector<4x32xf32>
      %205 = arith.mulf %203, %204 : vector<4x32xf32>
      %206 = vector.broadcast %185 : vector<1x32xf32> to vector<4x32xf32>
      %207 = arith.addf %205, %206 : vector<4x32xf32>
      %c0_96 = arith.constant 0 : index
      %c0_97 = arith.constant 0 : index
      %208 = vector.load %arg6[%c0_96, %c0_97] : memref<5x32xf32, #tpu.memory_space<vmem>>, vector<5x32xf32>
      %209 = vector.shape_cast %207 : vector<4x32xf32> to vector<1x4x32xf32>
      %210 = vector.extract_strided_slice %208 {offsets = [0, 0], sizes = [4, 32], strides = [1, 1]} : vector<5x32xf32> to vector<4x32xf32>
      %211 = vector.shape_cast %210 : vector<4x32xf32> to vector<1x4x32xf32>
      %212 = arith.addf %209, %211 : vector<1x4x32xf32>
      %c0_98 = arith.constant 0 : index
      %c0_99 = arith.constant 0 : index
      %c0_100 = arith.constant 0 : index
      %213 = vector.load %arg17[%c0_98, %c0_99, %c0_100] : memref<1x5x32xf32, #tpu.memory_space<vmem>>, vector<1x4x32xf32>
      tpu.vector_store %arg17[%c0_98, %c0_99, %c0_100], %212 {strides = array<i32>} : memref<1x5x32xf32, #tpu.memory_space<vmem>>, vector<1x4x32xf32>,
      %c3_101 = arith.constant 3 : index
      %c0_102 = arith.constant 0 : index
      %214 = vector.load %arg5[%c3_101, %c0_102] : memref<8x32xf32, #tpu.memory_space<vmem>>, vector<1x32xf32>
      %215 = vector.extract_strided_slice %208 {offsets = [4, 0], sizes = [1, 32], strides = [1, 1]} : vector<5x32xf32> to vector<1x32xf32>
      %216 = arith.addf %214, %215 : vector<1x32xf32>
      %217 = vector.shape_cast %216 : vector<1x32xf32> to vector<1x1x32xf32>
      %c0_103 = arith.constant 0 : index
      %c4_104 = arith.constant 4 : index
      %c0_105 = arith.constant 0 : index
      %218 = vector.load %arg17[%c0_103, %c4_104, %c0_105] : memref<1x5x32xf32, #tpu.memory_space<vmem>>, vector<1x1x32xf32>
      tpu.vector_store %arg17[%c0_103, %c4_104, %c0_105], %217 {strides = array<i32>} : memref<1x5x32xf32, #tpu.memory_space<vmem>>, vector<1x1x32xf32>,
    } else {
    }
    %c0 = arith.constant 0 : index
    %c0_1 = arith.constant 0 : index
    %c0_2 = arith.constant 0 : index
    %3 = vector.load %arg17[%c0, %c0_1, %c0_2] : memref<1x5x32xf32, #tpu.memory_space<vmem>>, vector<1x5x32xf32>
    %4 = vector.shape_cast %3 : vector<1x5x32xf32> to vector<5x32xf32>
    %c0_3 = arith.constant 0 : index
    %c0_4 = arith.constant 0 : index
    %c0_5 = arith.constant 0 : index
    %5 = vector.load %arg9[%c0_3, %c0_4, %c0_5] : memref<1x8x32xf32, #tpu.memory_space<vmem>>, vector<1x1x32xf32>
    %6 = vector.shape_cast %5 : vector<1x1x32xf32> to vector<1x32xf32>
    %c0_6 = arith.constant 0 : index
    %c1 = arith.constant 1 : index
    %c0_7 = arith.constant 0 : index
    %7 = vector.load %arg9[%c0_6, %c1, %c0_7] : memref<1x8x32xf32, #tpu.memory_space<vmem>>, vector<1x1x32xf32>
    %8 = vector.shape_cast %7 : vector<1x1x32xf32> to vector<1x32xf32>
    %c0_8 = arith.constant 0 : index
    %c2 = arith.constant 2 : index
    %c0_9 = arith.constant 0 : index
    %9 = vector.load %arg9[%c0_8, %c2, %c0_9] : memref<1x8x32xf32, #tpu.memory_space<vmem>>, vector<1x1x32xf32>
    %10 = vector.shape_cast %9 : vector<1x1x32xf32> to vector<1x32xf32>
    %c0_10 = arith.constant 0 : index
    %c3 = arith.constant 3 : index
    %c0_11 = arith.constant 0 : index
    %11 = vector.load %arg9[%c0_10, %c3, %c0_11] : memref<1x8x32xf32, #tpu.memory_space<vmem>>, vector<1x1x32xf32>
    %12 = vector.shape_cast %11 : vector<1x1x32xf32> to vector<1x32xf32>
    %c0_12 = arith.constant 0 : index
    %c4 = arith.constant 4 : index
    %c0_13 = arith.constant 0 : index
    %13 = vector.load %arg9[%c0_12, %c4, %c0_13] : memref<1x8x32xf32, #tpu.memory_space<vmem>>, vector<1x1x32xf32>
    %14 = vector.shape_cast %13 : vector<1x1x32xf32> to vector<1x32xf32>
    %c0_14 = arith.constant 0 : index
    %c5 = arith.constant 5 : index
    %c0_15 = arith.constant 0 : index
    %15 = vector.load %arg9[%c0_14, %c5, %c0_15] : memref<1x8x32xf32, #tpu.memory_space<vmem>>, vector<1x1x32xf32>
    %16 = vector.shape_cast %15 : vector<1x1x32xf32> to vector<1x32xf32>
    %cst = arith.constant dense<0.000000e+00> : vector<5xf32>
    %17 = vector.multi_reduction <add>, %4, %cst [1] : vector<5x32xf32> to vector<5xf32>
    %18 = vector.shape_cast %17 : vector<5xf32> to vector<5x1xf32>
    %cst_16 = arith.constant 3.200000e+01 : f32
    %19 = vector.broadcast %cst_16 : f32 to vector<5x1xf32>
    %20 = arith.divf %18, %19 : vector<5x1xf32>
    %21 = vector.broadcast %20 : vector<5x1xf32> to vector<5x32xf32>
    %22 = arith.subf %4, %21 : vector<5x32xf32>
    %23 = arith.mulf %22, %22 : vector<5x32xf32>
    %cst_17 = arith.constant dense<0.000000e+00> : vector<5xf32>
    %24 = vector.multi_reduction <add>, %23, %cst_17 [1] : vector<5x32xf32> to vector<5xf32>
    %25 = vector.shape_cast %24 : vector<5xf32> to vector<5x1xf32>
    %cst_18 = arith.constant 3.200000e+01 : f32
    %26 = vector.broadcast %cst_18 : f32 to vector<5x1xf32>
    %27 = arith.divf %25, %26 : vector<5x1xf32>
    %28 = vector.broadcast %20 : vector<5x1xf32> to vector<5x32xf32>
    %29 = arith.subf %4, %28 : vector<5x32xf32>
    %cst_19 = arith.constant 9.99999974E-6 : f32
    %30 = vector.broadcast %cst_19 : f32 to vector<5x1xf32>
    %31 = arith.addf %27, %30 : vector<5x1xf32>
    %32 = math.rsqrt %31 : vector<5x1xf32>
    %33 = vector.broadcast %32 : vector<5x1xf32> to vector<5x32xf32>
    %34 = arith.mulf %29, %33 : vector<5x32xf32>
    %35 = vector.broadcast %6 : vector<1x32xf32> to vector<5x32xf32>
    %36 = arith.mulf %34, %35 : vector<5x32xf32>
    %37 = vector.broadcast %8 : vector<1x32xf32> to vector<5x32xf32>
    %38 = arith.addf %36, %37 : vector<5x32xf32>
    %39 = arith.truncf %38 : vector<5x32xf32> to vector<5x32xbf16>
    %c0_20 = arith.constant 0 : index
    %c0_21 = arith.constant 0 : index
    %c0_22 = arith.constant 0 : index
    %40 = vector.load %arg10[%c0_20, %c0_21, %c0_22] : memref<1x32x96xbf16, #tpu.memory_space<vmem>>, vector<1x32x96xbf16>
    %41 = vector.shape_cast %40 : vector<1x32x96xbf16> to vector<32x96xbf16>
    %cst_23 = arith.constant dense<0.000000e+00> : vector<5x96xf32>
    %42 = tpu.matmul %39, %41, %cst_23 {dimension_numbers = #tpu.dot_dimension_numbers<[1], [0], [0], [1], [0, 0, 1, 1], [], []>} : vector<5x32xbf16>, vector<32x96xbf16>, vector<5x96xf32> -> vector<5x96xf32>
    %c0_24 = arith.constant 0 : index
    %c0_25 = arith.constant 0 : index
    %c0_26 = arith.constant 0 : index
    %43 = vector.load %arg11[%c0_24, %c0_25, %c0_26] : memref<1x1x96xf32, #tpu.memory_space<vmem>>, vector<1x1x96xf32>
    %44 = vector.shape_cast %43 : vector<1x1x96xf32> to vector<1x96xf32>
    %45 = vector.broadcast %44 : vector<1x96xf32> to vector<5x96xf32>
    %46 = arith.addf %42, %45 : vector<5x96xf32>
    %47 = vector.shape_cast %46 : vector<5x96xf32> to vector<1x5x96xf32>
    %48 = arith.truncf %47 : vector<1x5x96xf32> to vector<1x5x96xbf16>
    %49 = vector.extract_strided_slice %48 {offsets = [0, 0, 0], sizes = [1, 5, 16], strides = [1, 1, 1]} : vector<1x5x96xbf16> to vector<1x5x16xbf16>
    %50 = vector.extract_strided_slice %48 {offsets = [0, 0, 32], sizes = [1, 5, 16], strides = [1, 1, 1]} : vector<1x5x96xbf16> to vector<1x5x16xbf16>
    %51 = vector.extract_strided_slice %48 {offsets = [0, 0, 64], sizes = [1, 5, 16], strides = [1, 1, 1]} : vector<1x5x96xbf16> to vector<1x5x16xbf16>
    "tpu.trace_start"() <{level = 10 : i32, message = "bqd,bkd->bqk"}> : () -> ()
    %cst_27 = arith.constant dense<0.000000e+00> : vector<1x5x5xf32>
    %52 = tpu.matmul %49, %50, %cst_27 {dimension_numbers = #tpu.dot_dimension_numbers<[2], [2], [1], [1], [0, 0, 0, 1, 1, 1], [0], [0]>} : vector<1x5x16xbf16>, vector<1x5x16xbf16>, vector<1x5x5xf32> -> vector<1x5x5xf32>
    "tpu.trace_stop"() : () -> ()
    %cst_28 = arith.constant 2.500000e-01 : f32
    %53 = vector.broadcast %cst_28 : f32 to vector<1x5x5xf32>
    %54 = arith.mulf %52, %53 : vector<1x5x5xf32>
    %cst_29 = arith.constant dense<0xFF800000> : vector<1x5xf32>
    %55 = vector.multi_reduction <maximumf>, %54, %cst_29 [2] : vector<1x5x5xf32> to vector<1x5xf32>
    %56 = vector.shape_cast %55 : vector<1x5xf32> to vector<1x5x1xf32>
    %57 = vector.broadcast %56 : vector<1x5x1xf32> to vector<1x5x5xf32>
    %58 = arith.subf %54, %57 : vector<1x5x5xf32>
    %59 = math.exp %58 : vector<1x5x5xf32>
    %cst_30 = arith.constant dense<0.000000e+00> : vector<1x5xf32>
    %60 = vector.multi_reduction <add>, %59, %cst_30 [2] : vector<1x5x5xf32> to vector<1x5xf32>
    %61 = vector.shape_cast %60 : vector<1x5xf32> to vector<1x5x1xf32>
    %62 = tpu.reciprocal %61 {approx = true} : vector<1x5x1xf32> -> vector<1x5x1xf32>
    %63 = vector.broadcast %62 : vector<1x5x1xf32> to vector<1x5x5xf32>
    %64 = arith.mulf %59, %63 : vector<1x5x5xf32>
    %65 = arith.truncf %64 : vector<1x5x5xf32> to vector<1x5x5xbf16>
    "tpu.trace_start"() <{level = 10 : i32, message = "bqk,bkd->bqd"}> : () -> ()
    %cst_31 = arith.constant dense<0.000000e+00> : vector<1x5x16xf32>
    %66 = tpu.matmul %65, %51, %cst_31 {dimension_numbers = #tpu.dot_dimension_numbers<[2], [1], [1], [2], [0, 0, 0, 1, 1, 2], [0], [0]>} : vector<1x5x5xbf16>, vector<1x5x16xbf16>, vector<1x5x16xf32> -> vector<1x5x16xf32>
    "tpu.trace_stop"() : () -> ()
    %67 = vector.shape_cast %66 : vector<1x5x16xf32> to vector<5x16xf32>
    %c0_32 = arith.constant 0 : index
    %c0_33 = arith.constant 0 : index
    %68 = vector.load %arg18[%c0_32, %c0_33] : memref<5x32xf32, #tpu.memory_space<vmem>>, vector<5x16xf32>
    tpu.vector_store %arg18[%c0_32, %c0_33], %67 {strides = array<i32>} : memref<5x32xf32, #tpu.memory_space<vmem>>, vector<5x16xf32>,
    %69 = vector.extract_strided_slice %48 {offsets = [0, 0, 16], sizes = [1, 5, 16], strides = [1, 1, 1]} : vector<1x5x96xbf16> to vector<1x5x16xbf16>
    %70 = vector.extract_strided_slice %48 {offsets = [0, 0, 48], sizes = [1, 5, 16], strides = [1, 1, 1]} : vector<1x5x96xbf16> to vector<1x5x16xbf16>
    %71 = vector.extract_strided_slice %48 {offsets = [0, 0, 80], sizes = [1, 5, 16], strides = [1, 1, 1]} : vector<1x5x96xbf16> to vector<1x5x16xbf16>
    "tpu.trace_start"() <{level = 10 : i32, message = "bqd,bkd->bqk"}> : () -> ()
    %cst_34 = arith.constant dense<0.000000e+00> : vector<1x5x5xf32>
    %72 = tpu.matmul %69, %70, %cst_34 {dimension_numbers = #tpu.dot_dimension_numbers<[2], [2], [1], [1], [0, 0, 0, 1, 1, 1], [0], [0]>} : vector<1x5x16xbf16>, vector<1x5x16xbf16>, vector<1x5x5xf32> -> vector<1x5x5xf32>
    "tpu.trace_stop"() : () -> ()
    %cst_35 = arith.constant 2.500000e-01 : f32
    %73 = vector.broadcast %cst_35 : f32 to vector<1x5x5xf32>
    %74 = arith.mulf %72, %73 : vector<1x5x5xf32>
    %cst_36 = arith.constant dense<0xFF800000> : vector<1x5xf32>
    %75 = vector.multi_reduction <maximumf>, %74, %cst_36 [2] : vector<1x5x5xf32> to vector<1x5xf32>
    %76 = vector.shape_cast %75 : vector<1x5xf32> to vector<1x5x1xf32>
    %77 = vector.broadcast %76 : vector<1x5x1xf32> to vector<1x5x5xf32>
    %78 = arith.subf %74, %77 : vector<1x5x5xf32>
    %79 = math.exp %78 : vector<1x5x5xf32>
    %cst_37 = arith.constant dense<0.000000e+00> : vector<1x5xf32>
    %80 = vector.multi_reduction <add>, %79, %cst_37 [2] : vector<1x5x5xf32> to vector<1x5xf32>
    %81 = vector.shape_cast %80 : vector<1x5xf32> to vector<1x5x1xf32>
    %82 = tpu.reciprocal %81 {approx = true} : vector<1x5x1xf32> -> vector<1x5x1xf32>
    %83 = vector.broadcast %82 : vector<1x5x1xf32> to vector<1x5x5xf32>
    %84 = arith.mulf %79, %83 : vector<1x5x5xf32>
    %85 = arith.truncf %84 : vector<1x5x5xf32> to vector<1x5x5xbf16>
    "tpu.trace_start"() <{level = 10 : i32, message = "bqk,bkd->bqd"}> : () -> ()
    %cst_38 = arith.constant dense<0.000000e+00> : vector<1x5x16xf32>
    %86 = tpu.matmul %85, %71, %cst_38 {dimension_numbers = #tpu.dot_dimension_numbers<[2], [1], [1], [2], [0, 0, 0, 1, 1, 2], [0], [0]>} : vector<1x5x5xbf16>, vector<1x5x16xbf16>, vector<1x5x16xf32> -> vector<1x5x16xf32>
    "tpu.trace_stop"() : () -> ()
    %87 = vector.shape_cast %86 : vector<1x5x16xf32> to vector<5x16xf32>
    %c0_39 = arith.constant 0 : index
    %c16 = arith.constant 16 : index
    %88 = vector.load %arg18[%c0_39, %c16] : memref<5x32xf32, #tpu.memory_space<vmem>>, vector<5x16xf32>
    tpu.vector_store %arg18[%c0_39, %c16], %87 {strides = array<i32>} : memref<5x32xf32, #tpu.memory_space<vmem>>, vector<5x16xf32>,
    %c0_40 = arith.constant 0 : index
    %c0_41 = arith.constant 0 : index
    %89 = vector.load %arg18[%c0_40, %c0_41] : memref<5x32xf32, #tpu.memory_space<vmem>>, vector<5x32xf32>
    %90 = arith.truncf %89 : vector<5x32xf32> to vector<5x32xbf16>
    %c0_42 = arith.constant 0 : index
    %c0_43 = arith.constant 0 : index
    %c0_44 = arith.constant 0 : index
    %91 = vector.load %arg12[%c0_42, %c0_43, %c0_44] : memref<1x32x32xbf16, #tpu.memory_space<vmem>>, vector<1x32x32xbf16>
    %92 = vector.shape_cast %91 : vector<1x32x32xbf16> to vector<32x32xbf16>
    %cst_45 = arith.constant dense<0.000000e+00> : vector<5x32xf32>
    %93 = tpu.matmul %90, %92, %cst_45 {dimension_numbers = #tpu.dot_dimension_numbers<[1], [0], [0], [1], [0, 0, 1, 1], [], []>} : vector<5x32xbf16>, vector<32x32xbf16>, vector<5x32xf32> -> vector<5x32xf32>
    %94 = vector.broadcast %14 : vector<1x32xf32> to vector<5x32xf32>
    %95 = arith.addf %93, %94 : vector<5x32xf32>
    %96 = arith.addf %4, %95 : vector<5x32xf32>
    %cst_46 = arith.constant dense<0.000000e+00> : vector<5xf32>
    %97 = vector.multi_reduction <add>, %96, %cst_46 [1] : vector<5x32xf32> to vector<5xf32>
    %98 = vector.shape_cast %97 : vector<5xf32> to vector<5x1xf32>
    %cst_47 = arith.constant 3.200000e+01 : f32
    %99 = vector.broadcast %cst_47 : f32 to vector<5x1xf32>
    %100 = arith.divf %98, %99 : vector<5x1xf32>
    %101 = vector.broadcast %100 : vector<5x1xf32> to vector<5x32xf32>
    %102 = arith.subf %96, %101 : vector<5x32xf32>
    %103 = arith.mulf %102, %102 : vector<5x32xf32>
    %cst_48 = arith.constant dense<0.000000e+00> : vector<5xf32>
    %104 = vector.multi_reduction <add>, %103, %cst_48 [1] : vector<5x32xf32> to vector<5xf32>
    %105 = vector.shape_cast %104 : vector<5xf32> to vector<5x1xf32>
    %cst_49 = arith.constant 3.200000e+01 : f32
    %106 = vector.broadcast %cst_49 : f32 to vector<5x1xf32>
    %107 = arith.divf %105, %106 : vector<5x1xf32>
    %108 = vector.broadcast %100 : vector<5x1xf32> to vector<5x32xf32>
    %109 = arith.subf %96, %108 : vector<5x32xf32>
    %cst_50 = arith.constant 9.99999974E-6 : f32
    %110 = vector.broadcast %cst_50 : f32 to vector<5x1xf32>
    %111 = arith.addf %107, %110 : vector<5x1xf32>
    %112 = math.rsqrt %111 : vector<5x1xf32>
    %113 = vector.broadcast %112 : vector<5x1xf32> to vector<5x32xf32>
    %114 = arith.mulf %109, %113 : vector<5x32xf32>
    %115 = vector.broadcast %10 : vector<1x32xf32> to vector<5x32xf32>
    %116 = arith.mulf %114, %115 : vector<5x32xf32>
    %117 = vector.broadcast %12 : vector<1x32xf32> to vector<5x32xf32>
    %118 = arith.addf %116, %117 : vector<5x32xf32>
    %119 = arith.truncf %118 : vector<5x32xf32> to vector<5x32xbf16>
    %c0_51 = arith.constant 0 : index
    %c0_52 = arith.constant 0 : index
    %c0_53 = arith.constant 0 : index
    %120 = vector.load %arg13[%c0_51, %c0_52, %c0_53] : memref<1x32x32xbf16, #tpu.memory_space<vmem>>, vector<1x32x32xbf16>
    %121 = vector.shape_cast %120 : vector<1x32x32xbf16> to vector<32x32xbf16>
    %cst_54 = arith.constant dense<0.000000e+00> : vector<5x32xf32>
    %122 = tpu.matmul %119, %121, %cst_54 {dimension_numbers = #tpu.dot_dimension_numbers<[1], [0], [0], [1], [0, 0, 1, 1], [], []>} : vector<5x32xbf16>, vector<32x32xbf16>, vector<5x32xf32> -> vector<5x32xf32>
    %c0_55 = arith.constant 0 : index
    %c0_56 = arith.constant 0 : index
    %c0_57 = arith.constant 0 : index
    %123 = vector.load %arg14[%c0_55, %c0_56, %c0_57] : memref<1x1x32xf32, #tpu.memory_space<vmem>>, vector<1x1x32xf32>
    %124 = vector.shape_cast %123 : vector<1x1x32xf32> to vector<1x32xf32>
    %125 = vector.broadcast %124 : vector<1x32xf32> to vector<5x32xf32>
    %126 = arith.addf %122, %125 : vector<5x32xf32>
    %cst_58 = arith.constant 5.000000e-01 : f32
    %127 = vector.broadcast %cst_58 : f32 to vector<5x32xf32>
    %128 = arith.mulf %127, %126 : vector<5x32xf32>
    %cst_59 = arith.constant 4.471500e-02 : f32
    %129 = vector.broadcast %cst_59 : f32 to vector<5x32xf32>
    %130 = arith.mulf %129, %126 : vector<5x32xf32>
    %131 = arith.mulf %130, %126 : vector<5x32xf32>
    %132 = arith.mulf %131, %126 : vector<5x32xf32>
    %133 = arith.addf %126, %132 : vector<5x32xf32>
    %cst_60 = arith.constant 0.797884583 : f32
    %134 = vector.broadcast %cst_60 : f32 to vector<5x32xf32>
    %135 = arith.mulf %134, %133 : vector<5x32xf32>
    %136 = math.tanh %135 : vector<5x32xf32>
    %cst_61 = arith.constant 1.000000e+00 : f32
    %137 = vector.broadcast %cst_61 : f32 to vector<5x32xf32>
    %138 = arith.addf %137, %136 : vector<5x32xf32>
    %139 = arith.mulf %128, %138 : vector<5x32xf32>
    %140 = arith.truncf %139 : vector<5x32xf32> to vector<5x32xbf16>
    %c0_62 = arith.constant 0 : index
    %c0_63 = arith.constant 0 : index
    %c0_64 = arith.constant 0 : index
    %141 = vector.load %arg15[%c0_62, %c0_63, %c0_64] : memref<1x32x32xbf16, #tpu.memory_space<vmem>>, vector<1x32x32xbf16>
    %142 = vector.shape_cast %141 : vector<1x32x32xbf16> to vector<32x32xbf16>
    %cst_65 = arith.constant dense<0.000000e+00> : vector<5x32xf32>
    %143 = tpu.matmul %140, %142, %cst_65 {dimension_numbers = #tpu.dot_dimension_numbers<[1], [0], [0], [1], [0, 0, 1, 1], [], []>} : vector<5x32xbf16>, vector<32x32xbf16>, vector<5x32xf32> -> vector<5x32xf32>
    %144 = vector.broadcast %16 : vector<1x32xf32> to vector<5x32xf32>
    %145 = arith.addf %143, %144 : vector<5x32xf32>
    %146 = arith.addf %96, %145 : vector<5x32xf32>
    %147 = vector.shape_cast %146 : vector<5x32xf32> to vector<1x5x32xf32>
    %c0_66 = arith.constant 0 : index
    %c0_67 = arith.constant 0 : index
    %c0_68 = arith.constant 0 : index
    %148 = vector.load %arg17[%c0_66, %c0_67, %c0_68] : memref<1x5x32xf32, #tpu.memory_space<vmem>>, vector<1x5x32xf32>
    tpu.vector_store %arg17[%c0_66, %c0_67, %c0_68], %147 {strides = array<i32>} : memref<1x5x32xf32, #tpu.memory_space<vmem>>, vector<1x5x32xf32>,
    %c1_i32 = arith.constant 1 : i32
    %149 = arith.cmpi eq, %arg1, %c1_i32 : i32
    %150 = arith.extui %149 : i1 to i32
    %c0_i32_69 = arith.constant 0 : i32
    %151 = arith.cmpi ne, %150, %c0_i32_69 : i32
    scf.if %151 {
      %152 = vector.shape_cast %146 : vector<5x32xf32> to vector<1x5x32xf32>
      %cst_70 = arith.constant dense<0.000000e+00> : vector<1x32xf32>
      %153 = vector.multi_reduction <add>, %152, %cst_70 [1] : vector<1x5x32xf32> to vector<1x32xf32>
      %154 = vector.shape_cast %153 : vector<1x32xf32> to vector<1x1x32xf32>
      %cst_71 = arith.constant 5.000000e+00 : f32
      %155 = vector.broadcast %cst_71 : f32 to vector<1x1x32xf32>
      %156 = arith.divf %154, %155 : vector<1x1x32xf32>
      %157 = vector.shape_cast %156 : vector<1x1x32xf32> to vector<1x32xf32>
      %158 = arith.truncf %157 : vector<1x32xf32> to vector<1x32xbf16>
      %c0_72 = arith.constant 0 : index
      %c0_73 = arith.constant 0 : index
      %159 = vector.load %arg7[%c0_72, %c0_73] : memref<32x128xbf16, #tpu.memory_space<vmem>>, vector<32x128xbf16>
      %cst_74 = arith.constant dense<0.000000e+00> : vector<1x128xf32>
      %160 = tpu.matmul %158, %159, %cst_74 {dimension_numbers = #tpu.dot_dimension_numbers<[1], [0], [0], [1], [0, 0, 1, 1], [], []>} : vector<1x32xbf16>, vector<32x128xbf16>, vector<1x128xf32> -> vector<1x128xf32>
      %c0_75 = arith.constant 0 : index
      %c0_76 = arith.constant 0 : index
      %161 = vector.load %arg8[%c0_75, %c0_76] : memref<1x128xf32, #tpu.memory_space<vmem>>, vector<1x128xf32>
      %162 = arith.addf %160, %161 : vector<1x128xf32>
      %c0_77 = arith.constant 0 : index
      %c0_78 = arith.constant 0 : index
      %c0_79 = arith.constant 0 : index
      %163 = vector.load %arg16[%c0_77, %c0_78, %c0_79] : memref<1x1x128xf32, #tpu.memory_space<vmem>>, vector<1x1x128xf32>
      %164 = vector.shape_cast %163 : vector<1x1x128xf32> to vector<1x128xf32>
      %165 = vector.shape_cast %162 : vector<1x128xf32> to vector<1x1x128xf32>
      tpu.vector_store %arg16[%c0_77, %c0_78, %c0_79], %165 {strides = array<i32>} : memref<1x1x128xf32, #tpu.memory_space<vmem>>, vector<1x1x128xf32>,
    } else {
    }
    return
  }
  func.func @transform_0(%arg0: i32, %arg1: i32) -> (i32, i32, i32) {
    %c0_i32 = arith.constant 0 : i32
    %c0_i32_0 = arith.constant 0 : i32
    %c0_i32_1 = arith.constant 0 : i32
    return %arg0, %c0_i32, %c0_i32_0 : i32, i32, i32
  }
  func.func @transform_1(%arg0: i32, %arg1: i32) -> (i32, i32) {
    %c0_i32 = arith.constant 0 : i32
    %c0_i32_0 = arith.constant 0 : i32
    %c0_i32_1 = arith.constant 0 : i32
    return %c0_i32, %c0_i32_0 : i32, i32
  }
  func.func @transform_2(%arg0: i32, %arg1: i32) -> (i32, i32) {
    %c0_i32 = arith.constant 0 : i32
    %c0_i32_0 = arith.constant 0 : i32
    %c0_i32_1 = arith.constant 0 : i32
    return %c0_i32, %c0_i32_0 : i32, i32
  }
  func.func @transform_3(%arg0: i32, %arg1: i32) -> (i32, i32) {
    %c0_i32 = arith.constant 0 : i32
    %c0_i32_0 = arith.constant 0 : i32
    %c0_i32_1 = arith.constant 0 : i32
    return %c0_i32, %c0_i32_0 : i32, i32
  }
  func.func @transform_4(%arg0: i32, %arg1: i32) -> (i32, i32) {
    %c0_i32 = arith.constant 0 : i32
    %c0_i32_0 = arith.constant 0 : i32
    %c0_i32_1 = arith.constant 0 : i32
    return %c0_i32, %c0_i32_0 : i32, i32
  }
  func.func @transform_5(%arg0: i32, %arg1: i32) -> (i32, i32) {
    %c0_i32 = arith.constant 0 : i32
    %c0_i32_0 = arith.constant 0 : i32
    %c0_i32_1 = arith.constant 0 : i32
    return %c0_i32, %c0_i32_0 : i32, i32
  }
  func.func @transform_6(%arg0: i32, %arg1: i32) -> (i32, i32) {
    %c0_i32 = arith.constant 0 : i32
    %c0_i32_0 = arith.constant 0 : i32
    %c0_i32_1 = arith.constant 0 : i32
    return %c0_i32, %c0_i32_0 : i32, i32
  }
  func.func @transform_7(%arg0: i32, %arg1: i32) -> (i32, i32, i32) {
    %c0_i32 = arith.constant 0 : i32
    %c0_i32_0 = arith.constant 0 : i32
    %c0_i32_1 = arith.constant 0 : i32
    return %arg1, %c0_i32, %c0_i32_0 : i32, i32, i32
  }
  func.func @transform_8(%arg0: i32, %arg1: i32) -> (i32, i32, i32) {
    %c0_i32 = arith.constant 0 : i32
    %c0_i32_0 = arith.constant 0 : i32
    %c0_i32_1 = arith.constant 0 : i32
    return %arg1, %c0_i32, %c0_i32_0 : i32, i32, i32
  }
  func.func @transform_9(%arg0: i32, %arg1: i32) -> (i32, i32, i32) {
    %c0_i32 = arith.constant 0 : i32
    %c0_i32_0 = arith.constant 0 : i32
    %c0_i32_1 = arith.constant 0 : i32
    return %arg1, %c0_i32, %c0_i32_0 : i32, i32, i32
  }
  func.func @transform_10(%arg0: i32, %arg1: i32) -> (i32, i32, i32) {
    %c0_i32 = arith.constant 0 : i32
    %c0_i32_0 = arith.constant 0 : i32
    %c0_i32_1 = arith.constant 0 : i32
    return %arg1, %c0_i32, %c0_i32_0 : i32, i32, i32
  }
  func.func @transform_11(%arg0: i32, %arg1: i32) -> (i32, i32, i32) {
    %c0_i32 = arith.constant 0 : i32
    %c0_i32_0 = arith.constant 0 : i32
    %c0_i32_1 = arith.constant 0 : i32
    return %arg1, %c0_i32, %c0_i32_0 : i32, i32, i32
  }
  func.func @transform_12(%arg0: i32, %arg1: i32) -> (i32, i32, i32) {
    %c0_i32 = arith.constant 0 : i32
    %c0_i32_0 = arith.constant 0 : i32
    %c0_i32_1 = arith.constant 0 : i32
    return %arg1, %c0_i32, %c0_i32_0 : i32, i32, i32
  }
  func.func @transform_13(%arg0: i32, %arg1: i32) -> (i32, i32, i32) {
    %c0_i32 = arith.constant 0 : i32
    %c0_i32_0 = arith.constant 0 : i32
    %c0_i32_1 = arith.constant 0 : i32
    return %arg1, %c0_i32, %c0_i32_0 : i32, i32, i32
  }
  func.func @transform_14(%arg0: i32, %arg1: i32) -> (i32, i32, i32) {
    %c0_i32 = arith.constant 0 : i32
    %c0_i32_0 = arith.constant 0 : i32
    %c0_i32_1 = arith.constant 0 : i32
    return %arg0, %c0_i32, %c0_i32_0 : i32, i32, i32
  }
}

</mosaic_0001>

<bundles_post_ra>
// kernel: tpu_custom_call.1
= control target key start
LH: loop header
LB: loop body
LE: loop exit
PB: predicated region body
PF: predicated region fallthrough
CT: control target
= control target key end

     0   :  { %s3062_s0 = inlined_call_operand.hbm [shape: f32[2,4,192], index: 0, kind: input, shape index: {}]   ;;  %s3063_s1 = inlined_call_operand.hbm [shape: f32[8,192], index: 1, kind: input, shape index: {}]   ;;  %s3064_s2 = inlined_call_operand.vmem [shape: bf16[192,32], index: 2, kind: input, shape index: {}]   ;;  %s3065_s3 = inlined_call_operand.hbm [shape: f32[8,32], index: 3, kind: input, shape index: {}]   ;;  %s3066_s4 = inlined_call_operand.hbm [shape: f32[5,32], index: 4, kind: input, shape index: {}]   ;;  %s3067_s5 = inlined_call_operand.vmem [shape: bf16[32,128], index: 5, kind: input, shape index: {}]   ;;  %s3068_s6 = inlined_call_operand.vmem [shape: f32[1,128], index: 6, kind: input, shape index: {}]   ;;  %s3069_s7 = inlined_call_operand.hbm [shape: f32[2,8,32], index: 7, kind: input, shape index: {}]   ;;  %s3070_s8 = inlined_call_operand.vmem [shape: bf16[2,32,96], index: 8, kind: input, shape index: {}]   ;;  %s3071_s9 = inlined_call_operand.vmem [shape: f32[2,1,96], index: 9, kind: input, shape index: {}]   ;;  %s3072_s10 = inlined_call_operand.vmem [shape: bf16[2,32,32], index: 10, kind: input, shape index: {}]   ;;  %s3073_s11 = inlined_call_operand.vmem [shape: bf16[2,32,32], index: 11, kind: input, shape index: {}]   ;;  %s3074_s12 = inlined_call_operand.vmem [shape: f32[2,1,32], index: 12, kind: input, shape index: {}]   ;;  %s3075_s13 = inlined_call_operand.vmem [shape: bf16[2,32,32], index: 13, kind: input, shape index: {}]   ;;  %s3076_s14 = inlined_call_operand.hbm [shape: f32[2,1,128], index: 14, kind: output, shape index: {}]  }
   0x1   :  { %3096 = sst [smem:[#allocation28_spill]] %s3062_s0 }
   0x2   :  { %3097 = sst [smem:[#allocation29_spill]] %s3063_s1 }
   0x3   :  { %3098 = sst [smem:[#allocation30_spill]] %s3064_s2 }
   0x4   :  { %3099 = sst [smem:[#allocation31_spill]] %s3065_s3 }
   0x5   :  { %3100 = sst [smem:[#allocation32_spill]] %s3066_s4 }
   0x6   :  { %3101 = sst [smem:[#allocation33_spill]] %s3067_s5 }
   0x7   :  { %3102 = sst [smem:[#allocation34_spill]] %s3068_s6 }
   0x8   :  { %3103 = sst [smem:[#allocation35_spill]] %s3069_s7 }
   0x9   :  { %3104 = sst [smem:[#allocation36_spill]] %s3070_s8 }
   0xa   :  { %3105 = sst [smem:[#allocation37_spill]] %s3071_s9 }
   0xb   :  { %3106 = sst [smem:[#allocation38_spill]] %s3072_s10 }
   0xc   :  { %3107 = sst [smem:[#allocation39_spill]] %s3073_s11 }
   0xd   :  { %3108 = sst [smem:[#allocation40_spill]] %s3074_s12 }
   0xe   :  { %3109 = sst [smem:[#allocation41_spill]] %s3075_s13 }
   0xf   :  { %3110 = sst [smem:[#allocation42_spill]] %s3076_s14 }
  0x10   :  { %19 = vsyncpa [#allocation5], 0 }
  0x11   :  { %21 = vsyncpa [#allocation5 + $0x1], 0 }
  0x12   :  { %22 = vsyncpa [#allocation8], 0 }
  0x13   :  { %23 = vsyncpa [#allocation11], 0 }
  0x14   :  { %24 = vsyncpa [#allocation6], 0 }
  0x15   :  { %26 = vsyncpa [#allocation6 + $0x1], 0  ;;  %s2519_s29 = smov 0   ;;  %s2521_s30 = smov 0  }
  0x16   :  { %s2523_s15 = smov 0   ;;  %s2525_s16 = smov 0  }
  0x17   :  { %s2527_s17 = smov 0   ;;  %s2529_s18 = smov 0  }
  0x18   :  { %s2531_s19 = smov 0   ;;  %s2533_s20 = smov 0  }
  0x19   :  { %s2535_s21 = smov 0   ;;  %s2537_s22 = smov 0  }
  0x1a   :  { %s2539_s23 = smov 0  }
  0x1b LB: > { %3111 = sst [smem:[#allocation19_spill]] %s2395_s16  ;;  %s2575_s24 = sadd.s32 4294967295, %s2423_s23   ;;  %s2423_s23 = sphi %s2539_s23, %s32_s23   ;;  %s2419_s22 = sphi %s2537_s22, %s3173_s22   ;;  %s2415_s21 = sphi %s2535_s21, %s3172_s21   ;;  %s2411_s20 = sphi %s2533_s20, %s3180_s20   ;;  %s2407_s19 = sphi %s2531_s19, %s3170_s19   ;;  %s2403_s18 = sphi %s2529_s18, %s3179_s18   ;;  %s2399_s17 = sphi %s2527_s17, %s3178_s17   ;;  %s2395_s16 = sphi %s2525_s16, %s3177_s16   ;;  %s2391_s15 = sphi %s2523_s15, %s3176_s15   ;;  %s2387_s30 = sphi %s2521_s30, %s3175_s30   ;;  %s2383_s29 = sphi %s2519_s29, %s3174_s29  }
  0x1c   : > { %3112 = sst [smem:[#allocation20_spill]] %s2411_s20  ;;  %p1789_p0 = scmp.ge.s32.totalorder %s2423_s23, 1 }
  0x1d   : > { %3113 = sst [smem:[#allocation21_spill]] %s2415_s21  ;;  %p3080_p1 = scmp.eq.s32.totalorder %s2575_s24, 0 }
  0x1e   : > { %3114 = sst [smem:[#allocation22_spill]] %s2419_s22  ;;  %p409_p2 = scmp.lt.s32.totalorder %s2423_s23, 5 }
  0x1f   : > { %s2425_s26 = smov [#allocation7]   ;;  %s3117_s1 = sld [smem:[#allocation29_spill]] }
  0x20   : > { %p2580_p3 = pnand %p1789_p0, %p409_p2  ;;  %s422_s27 = sshll.u32 %s2425_s26, 4  ;;  %s423_s27 = int_to_ptr.vmem [resolvable:$true] %s422_s27 }
  0x22   : > { %s3115_s25 = scalar_select %p2580_p3, 1, 0 }
  0x23   : > { %p1971_p4 = pneg %p2580_p3 }
  0x25   : > { %p2588_p5 = pnand %p1971_p4, %p3080_p1  ;;  %s2145_s6 = scalar_lea.hbm %s3117_s1, 256 }
  0x26   : > { %p2146_p6 = scmp.ne.s32.totalorder %s3117_s1, %s2145_s6  ;;  %p2152_p10 = scmp.lt.u32.totalorder %s2145_s6, %s3117_s1 }
  0x27   : > { %s3116_s28 = scalar_select %p2588_p5, 1, 0 }
  0x28   : > { %p2600_p7 = pneg %p2588_p5 }
  0x2a   : > { %p2148_p8 = pnand %p2600_p7, %p2146_p6 }
  0x2c   : > { %p2149_p9 = pneg %p2148_p8 }
  0x2e   : > { %p2154_p11 = pnand %p2152_p10, %p2149_p9 }
  0x30   : > { %2157 = shalt.err (!%p2154_p11)
}
  0x31   : > { %s2158_s14 = scalar_lea.vmem %s423_s27, 256  ;;  %p2166_p2 = scmp.lt.s32.totalorder %s423_s27, %s423_s27 }
  0x32   : > { %p2159_p12 = scmp.ne.s32.totalorder %s423_s27, %s2158_s14  ;;  %p2167_p4 = scmp.lt.s32.totalorder %s2158_s14, %s2158_s14 }
  0x34   : > { %p2161_p13 = pnand %p2159_p12, %p2600_p7  ;;  %p2168_p1 = por %p2167_p4, %p2166_p2 }
  0x36   : > { %p2162_p0 = pneg %p2161_p13 }
  0x38   : > { %p2169_p3 = pnand %p2168_p1, %p2162_p0 }
  0x3a   : > { %2172 = shalt.err (!%p2169_p3)
}
  0x3b   : > { %1974 = dma.hbm_to_vmem [thread:$0]  (!%p2588_p5), %s3117_s1, 256, %s423_s27, [#allocation8]  }
  0x3c   : > { %s1788_s6 = sadd.s32 4294967294, %s2423_s23   ;;  %p58_p1 = scmp.ne.s32.totalorder %s2403_s18, %s2399_s17 }
  0x3d   : > { %p3087_p3 = scmp.eq.s32.totalorder %s2423_s23, 0  ;;  %p64_p6 = scmp.ne.s32.totalorder %s2399_s17, %s2395_s16 }
  0x3e   : > { %p396_p8 = scmp.eq.s32.totalorder %s2575_s24, 3  ;;  %p402_p10 = scmp.eq.s32.totalorder %s1788_s6, 3 }
  0x3f   : > { %p2627_p9 = por %p3087_p3, %p58_p1  ;;  %p3120_p11 = scmp.eq.s32.totalorder %s2575_s24, 0 }
  0x40   : > { %p2637_p13 = por %p396_p8, %p58_p1  ;;  %p2641_p0 = por %p402_p10, %p64_p6 }
  0x41   : > { %p2633_p12 = por %p3120_p11, %p64_p6  ;;  %p3086_p2 = scmp.lt.s32.totalorder %s2423_s23, 4 }
  0x42   : > { %s3122_s27 = scalar_select %p2637_p13, 1, 0 }
  0x43   : > { %s3121_s14 = scalar_select %p2633_p12, 1, 0 }
  0x44   : > { %3123 = sst [smem:[#allocation23_spill]] %s3122_s27  ;;  %s464_s5 = sand.u32 1, %s2423_s23  }
  0x45   : > { %s3124_s2 = scalar_select %p2641_p0, 1, 0 }
  0x46   : > { %s466_s13 = sand.u32 1, %s2403_s18   ;;  %s1861_s1 = sshll.u32 %s2419_s22, 7 }
  0x47   : > { %3125 = sst [smem:[#allocation24_spill]] %s3124_s2  ;;  %s1794_s12 = sshll.u32 %s466_s13, 3 }
  0x48   : > { %s3126_s0 = sld [smem:[#allocation28_spill]]  ;;  %s468_s10 = scalar_lea.vmem [#allocation4], %s1794_s12 }
  0x49   : > { %s476_s27 = sshll.u32 %s468_s10, 4  ;;  %p2660_p4 = pnand %p3086_p2, %p2627_p9  ;;  %s2654_s27 = int_to_ptr.vmem [resolvable:$true] %s476_s27 }
  0x4a   : > { %s2426_s13 = smov [#allocation9]  }
  0x4b   : > { %s2664_s16 = sshll.u32 %s2426_s13, 4  ;;  %p2175_p6 = pneg %p2660_p4  ;;  %s437_s16 = int_to_ptr.vmem [resolvable:$true] %s2664_s16 }
  0x4e   : > { %s2652_s11 = scalar_lea.hbm %s3126_s0, %s1861_s1  ;;  %s2666_s1 = scalar_lea.sflag [#allocation5], %s464_s5 }
  0x4f   : > { %s2173_s6 = scalar_lea.hbm %s2652_s11, 128  ;;  %s2178_s20 = scalar_lea.hbm %s3126_s0, 256 }
  0x50   : > { %p2174_p1 = scmp.ne.s32.totalorder %s2652_s11, %s2173_s6  ;;  %p2179_p9 = scmp.lt.u32.totalorder %s2652_s11, %s3126_s0 }
  0x51   : > { %p2180_p11 = scmp.lt.u32.totalorder %s2178_s20, %s2173_s6  ;;  %p2182_p3 = scmp.lt.u32.totalorder %s2173_s6, %s2652_s11 }
  0x52   : > { %p2176_p8 = pnand %p2175_p6, %p2174_p1 }
  0x53   : > { %p2181_p2 = por %p2180_p11, %p2179_p9 }
  0x54   : > { %p2177_p10 = pneg %p2176_p8 }
  0x55   : > { %p2183_p0 = por %p2182_p3, %p2181_p2 }
  0x57   : > { %p2184_p13 = pnand %p2183_p0, %p2177_p10 }
  0x59   : > { %2187 = shalt.err (!%p2184_p13)
}
  0x5a   : > { %s2188_s5 = scalar_lea.vmem %s2654_s27, 128  ;;  %s2427_s13 = smov [#allocation4]  }
  0x5b   : > { %p2189_p1 = scmp.ne.s32.totalorder %s2654_s27, %s2188_s5  ;;  %s2193_s10 = sshll.u32 %s2427_s13, 4  ;;  %s2194_s10 = int_to_ptr.vmem [resolvable:$false] %s2193_s10 }
  0x5c   : > { %s2195_s8 = scalar_lea.vmem %s2194_s10, 256  ;;  %p2196_p5 = scmp.lt.s32.totalorder %s2654_s27, %s2194_s10 }
  0x5d   : > { %p2191_p8 = pnand %p2189_p1, %p2175_p6  ;;  %p2197_p9 = scmp.lt.s32.totalorder %s2195_s8, %s2188_s5 }
  0x5f   : > { %p2192_p12 = pneg %p2191_p8  ;;  %p2198_p11 = por %p2197_p9, %p2196_p5 }
  0x61   : > { %p2199_p3 = pnand %p2198_p11, %p2192_p12 }
  0x63   : > { %2202 = shalt.err (!%p2199_p3)
}
  0x64   : > { %1984 = dma.hbm_to_vmem [thread:$0]  (!%p2660_p4), %s2652_s11, 128, %s2654_s27, %s2666_s1  }
  0x65   : > { %s2428_s9 = smov [#allocation10]   ;;  %s3128_s3 = sld [smem:[#allocation31_spill]] }
  0x66   : > { %s447_s6 = sshll.u32 %s2428_s9, 4  ;;  %s448_s6 = int_to_ptr.vmem [resolvable:$true] %s447_s6 }
  0x6b   : > { %s2203_s13 = scalar_lea.hbm %s3128_s3, 128 }
  0x6c   : > { %p2204_p5 = scmp.ne.s32.totalorder %s3128_s3, %s2203_s13  ;;  %p2210_p0 = scmp.lt.u32.totalorder %s2203_s13, %s3128_s3 }
  0x6e   : > { %p2206_p12 = pnand %p2204_p5, %p2600_p7 }
  0x70   : > { %p2207_p13 = pneg %p2206_p12 }
  0x72   : > { %p2212_p2 = pnand %p2210_p0, %p2207_p13 }
  0x74   : > { %2215 = shalt.err (!%p2212_p2)
}
  0x75   : > { %s2216_s11 = scalar_lea.vmem %s437_s16, 128  ;;  %p2224_p1 = scmp.lt.s32.totalorder %s437_s16, %s437_s16 }
  0x76   : > { %p2217_p4 = scmp.ne.s32.totalorder %s437_s16, %s2216_s11  ;;  %p2225_p8 = scmp.lt.s32.totalorder %s2216_s11, %s2216_s11 }
  0x78   : > { %p2219_p6 = pnand %p2217_p4, %p2600_p7  ;;  %p2226_p9 = por %p2225_p8, %p2224_p1 }
  0x7a   : > { %p2220_p10 = pneg %p2219_p6 }
  0x7c   : > { %p2227_p11 = pnand %p2226_p9, %p2220_p10 }
  0x7e   : > { %2230 = shalt.err (!%p2227_p11)
}
  0x7f   : > { %p3129_p3 = scmp.ne.s32.totalorder %s3116_s28, 0  ;;  %s3130_s4 = sld [smem:[#allocation32_spill]] }
  0x81   : > { %1977 = dma.hbm_to_vmem [thread:$0]  (!%p3129_p3), %s3128_s3, 128, %s437_s16, [#allocation8]  }
  0x85   : > { %s2231_s13 = scalar_lea.hbm %s3130_s4, 128 }
  0x86   : > { %p2232_p5 = scmp.ne.s32.totalorder %s3130_s4, %s2231_s13  ;;  %p2238_p0 = scmp.lt.u32.totalorder %s2231_s13, %s3130_s4 }
  0x88   : > { %p2234_p12 = pnand %p2232_p5, %p2600_p7 }
  0x8a   : > { %p2235_p13 = pneg %p2234_p12 }
  0x8c   : > { %p2240_p2 = pnand %p2238_p0, %p2235_p13 }
  0x8e   : > { %2243 = shalt.err (!%p2240_p2)
}
  0x8f   : > { %s2244_s11 = scalar_lea.vmem %s448_s6, 128  ;;  %p2252_p1 = scmp.lt.s32.totalorder %s448_s6, %s448_s6 }
  0x90   : > { %p2245_p4 = scmp.ne.s32.totalorder %s448_s6, %s2244_s11  ;;  %p2253_p8 = scmp.lt.s32.totalorder %s2244_s11, %s2244_s11 }
  0x92   : > { %p2247_p6 = pnand %p2245_p4, %p2600_p7  ;;  %p2254_p9 = por %p2253_p8, %p2252_p1 }
  0x94   : > { %p2248_p10 = pneg %p2247_p6 }
  0x96   : > { %p2255_p11 = pnand %p2254_p9, %p2248_p10 }
  0x98   : > { %2258 = shalt.err (!%p2255_p11)
}
  0x99   : > { %1980 = dma.hbm_to_vmem [thread:$0]  (!%p3129_p3), %s3130_s4, 128, %s448_s6, [#allocation11]  }
  0x9a   : > { %s41_s26 = sadd.s32 1, %s2415_s21  ;;  %s203_s28 = sadd.s32 1, %s2391_s15 }
  0x9b   : > { %p42_p7 = scmp.ge.s32.totalorder %s41_s26, 2  ;;  %p210_p5 = scmp.ne.s32.totalorder %s2391_s15, %s2387_s30 }
  0x9c   : > { %p216_p12 = scmp.ne.s32.totalorder %s2387_s30, %s2383_s29  ;;  %s3132_s9 = sadd.s32 1, %s2419_s22 }
  0x9d   : > { %s3182_s26 = smov (%p42_p7, %s41_s26), 0  ;;  %s3184_s9 = smov (!%p42_p7, %s3132_s9), %s2419_s22 }
  0x9e   : > { %3131 = sst [smem:[#allocation25_spill]] %s3182_s26  ;;  %s200_s12 = ssub.s32 %s2415_s21, %s3182_s26 }
  0x9f   : > { %p3133_p13 = scmp.eq.s32.totalorder %s2423_s23, 0  ;;  %p46_p3 = scmp.ge.s32.totalorder %s3184_s9, 2 }
  0xa0   : > { %p201_p2 = scmp.eq.s32.totalorder %s200_s12, 0  ;;  %p3135_p4 = scmp.eq.s32.totalorder %s2575_s24, 0 }
  0xa1   : > { %p2746_p0 = por %p210_p5, %p3133_p13  ;;  %s485_s6 = sand.u32 1, %s2391_s15  }
  0xa2   : > { %p2752_p6 = por %p216_p12, %p3135_p4  ;;  %s3186_s9 = smov (%p46_p3, %s3184_s9), 0 }
  0xa3   : > { %3137 = sst [smem:[#allocation26_spill]] %s3186_s9  ;;  %s48_s10 = ssub.s32 %s2419_s22, %s3186_s9 }
  0xa4   : > { %s2760_s13 = scalar_select %p201_p2, %s2391_s15, %s203_s28  }
  0xa5   : > { %s1797_s5 = sshll.u32 %s485_s6, 3  ;;  %p49_p10 = scmp.eq.s32.totalorder %s48_s10, 0 }
  0xa6   : > { %s1798_s2 = sshll.u32 %s2415_s21, 7  ;;  %s487_s8 = scalar_lea.vmem [#allocation12], %s1797_s5 }
  0xa7   : > { %s494_s11 = sshll.u32 %s487_s8, 4  ;;  %s3138_s16 = sadd.s32 1, %s2403_s18  ;;  %s2775_s11 = int_to_ptr.vmem [resolvable:$true] %s494_s11 }
  0xa8   : > { %s2768_s27 = scalar_select %p49_p10, %s2403_s18, %s3138_s16  }
  0xa9   : > { %s3140_s7 = sld [smem:[#allocation35_spill]]  ;;  %p3141_p1 = scmp.lt.s32.totalorder %s2423_s23, 4 }
  0xaa   : > { %3139 = sst [smem:[#allocation27_spill]] %s2768_s27 }
  0xab   : > { %p2781_p8 = pnand %p3141_p1, %p2746_p0 }
  0xad   : > { %p2261_p11 = pneg %p2781_p8 }
  0xaf   : > { %s2773_s3 = scalar_lea.hbm %s3140_s7, %s1798_s2  ;;  %s2264_s5 = scalar_lea.hbm %s3140_s7, 256 }
  0xb0   : > { %s2259_s6 = scalar_lea.hbm %s2773_s3, 128  ;;  %p2265_p12 = scmp.lt.u32.totalorder %s2773_s3, %s3140_s7 }
  0xb1   : > { %p2260_p9 = scmp.ne.s32.totalorder %s2773_s3, %s2259_s6  ;;  %p2266_p13 = scmp.lt.u32.totalorder %s2264_s5, %s2259_s6 }
  0xb2   : > { %p2268_p3 = scmp.lt.u32.totalorder %s2259_s6, %s2773_s3 }
  0xb3   : > { %p2262_p7 = pnand %p2261_p11, %p2260_p9  ;;  %p2267_p0 = por %p2266_p13, %p2265_p12 }
  0xb5   : > { %p2263_p5 = pneg %p2262_p7  ;;  %p2269_p2 = por %p2268_p3, %p2267_p0 }
  0xb7   : > { %p2270_p4 = pnand %p2269_p2, %p2263_p5 }
  0xb9   : > { %2273 = shalt.err (!%p2270_p4)
}
  0xba   : > { %s2274_s8 = scalar_lea.vmem %s2775_s11, 128  ;;  %s2429_s16 = smov [#allocation12]  }
  0xbb   : > { %p2275_p10 = scmp.ne.s32.totalorder %s2775_s11, %s2274_s8  ;;  %s2279_s12 = sshll.u32 %s2429_s16, 4  ;;  %s2280_s12 = int_to_ptr.vmem [resolvable:$false] %s2279_s12 }
  0xbc   : > { %s2281_s0 = scalar_lea.vmem %s2280_s12, 256  ;;  %p2282_p7 = scmp.lt.s32.totalorder %s2775_s11, %s2280_s12 }
  0xbd   : > { %p2277_p1 = pnand %p2275_p10, %p2261_p11  ;;  %p2283_p12 = scmp.lt.s32.totalorder %s2281_s0, %s2274_s8 }
  0xbf   : > { %p2278_p9 = pneg %p2277_p1  ;;  %p2284_p13 = por %p2283_p12, %p2282_p7 }
  0xc1   : > { %p2285_p0 = pnand %p2284_p13, %p2278_p9 }
  0xc3   : > { %2288 = shalt.err (!%p2285_p0)
}
  0xc4   : > { %1987 = dma.hbm_to_vmem [thread:$0]  (!%p2781_p8), %s2773_s3, 128, %s2775_s11, %s2666_s1  }
  0xc5   : > { %p3143_p5 = scmp.ne.s32.totalorder %s3115_s25, 0 }
  0xc6   : > { %s549_s6 = sand.u32 (!%p3143_p5), 1, %s2575_s24   ;;  %s2815_s10 = sand.u32 (!%p3143_p5), 1, %s2399_s17  }
  0xc7   : > { %547 = sbr.rel (%p3143_p5) target bundleno = 3870 (0xf1e), region = 76  ;;  %s1800_s5 = sshll.u32 (!%p3143_p5), %s2815_s10, 3 }
  0xc8   : > { %s550_s20 = scalar_lea.sflag (!%p3143_p5), [#allocation5], %s549_s6  ;;  %s553_s2 = scalar_lea.vmem (!%p3143_p5), [#allocation4], %s1800_s5 }
  0xc9   : > { %p3144_p11 = scmp.ne.s32.totalorder (!%p3143_p5), %s3121_s14, 0 }
  0xce   : > { %2362 = dma.done.wait (%p3144_p11), %s550_s20, 128  }
  0xcf   : > { %2364 = vsyncadd (%p3144_p11), %s550_s20, 4294967168  ;;  %p3145_p8 = scmp.eq.s32.totalorder %s2575_s24, 0 }
  0xd1   : > { %2366 = dma.done.wait (%p3145_p8), [#allocation8], 384   ;;  %p3146_p3 = pmov %p3145_p8 }
  0xd3   : > { %2368 = vsyncadd (%p3146_p3), [#allocation8], 4294966912  ;;  %p3147_p2 = pmov %p3146_p3 }
  0xd5   : > { %2370 = dma.done.wait (%p3147_p2), [#allocation11], 128   ;;  %p3148_p4 = pmov %p3147_p2 }
  0xd6   : > { %s572_s3 = sand.u32 1, %s2387_s30  }
  0xd7   : > { %2372 = vsyncadd (%p3148_p4), [#allocation11], 4294967168  ;;  %s1804_s25 = sshll.u32 %s572_s3, 3 }
  0xd8   : > { %s2831_s1 = scalar_lea.vmem [#allocation12], %s1804_s25 }
  0xd9   : > { %2374 = dma.done.wait (%p2752_p6), %s550_s20, 128  }
  0xda   : > { %2376 = vsyncadd (%p2752_p6), %s550_s20, 4294967168  ;;  %p649_p10 = scmp.lt.s32.totalorder %s2407_s19, 1  ;;  %s3150_s6 = sld [smem:[#allocation36_spill]] }
  0xdb   : > { %s3151_s3 = sld [smem:[#allocation38_spill]]  ;;  %s3152_s9 = sld [smem:[#allocation39_spill]] }
  0xdc   : > { %s2839_s14 = scalar_select %p649_p10, %s2407_s19, 1 }
  0xdd   : > { %s3153_s27 = sld [smem:[#allocation40_spill]]  ;;  %s3154_s16 = sld [smem:[#allocation41_spill]] }
  0xde   : > { %s1862_s24 = sshll.u32 %s2839_s14, 4  ;;  %s648_s0 = scalar_lea.vmem [#allocation13], %s2815_s10 }
  0xdf   : > { %p1813_p6 = scmp.ne.s32.totalorder %s2407_s19, 0 }
  0xe0   : > { %s2849_s5 = scalar_lea.vmem %s3150_s6, %s1862_s24  ;;  %v680_v0 = vld [vmem:[%s553_s2] sm:$0xff] (!%p1813_p6)  ;;  %vm687_vm0 = vcmask (!%p1813_p6), 1043456   ;;  %vm689_vm1 = vcmask (!%p1813_p6), 519168   ;;  %s3155_s21 = sld [smem:[#allocation30_spill]] (!%p1813_p6)  ;;  %v2430_v6 = vmov (!%p1813_p6), 0   ;;  %v700_v13 = vlaneseq (!%p1813_p6) }
  0xe1   : > { %s2854_s25 = scalar_lea.vmem %s3151_s3, %s1862_s24  ;;  %s2859_s26 = scalar_lea.vmem %s3152_s9, %s1862_s24  ;;  %v685_v1 = vcombine.high (!%p1813_p6), %v680_v0, %v680_v0  ;;  %v688_v2 = vsel (!%p1813_p6), %vm687_vm0, %v680_v0, 0.0  ;;  %862 = vmatprep.subr.bf16.mxu0 (!%p1813_p6), %v2430_v6  ;;  %v2431_v11 = vmov (!%p1813_p6), 839922192   ;;  %v681_v38 = vld [vmem:[#allocation7] ss:$8 sm:$0x3] (!%p1813_p6) }
  0xe2   : > { %679 = sbr.rel (%p1813_p6) target bundleno = 1085 (0x43d), region = 100  ;;  %v698_v12 = vunpack.c.l.s4 (!%p1813_p6), %v2431_v11  ;;  %v701_v15 = vshrl.u32 (!%p1813_p6), %v700_v13, 7  ;;  %v683_v39 = vld [vmem:[#allocation7 + $0x1] ss:$8 sm:$0x3] (!%p1813_p6)  ;;  %vm858_vm2 = vcmask (!%p1813_p6), 523264  }
  0xe3   : > { %s669_s11 = scalar_lea.vmem %s3153_s27, %s2839_s14  ;;  %s2868_s12 = scalar_lea.vmem %s3154_s16, %s1862_s24  ;;  %v690_v3 = vsel (!%p1813_p6), %vm689_vm1, %v685_v1, 0.0  ;;  %v1814_v54 = vld [vmem:[#allocation9 + $0x2] ss:$0 sm:$0xff] (!%p1813_p6)  ;;  %vm904_vm3 = vcmask (!%p1813_p6), 257024   ;;  %v929_v61 = vld [vmem:[#allocation10] sm:$0x1f] (!%p1813_p6) }
  0xe4   : > { %v691_v4 = vadd.f32 (!%p1813_p6), %v690_v3, %v688_v2  ;;  %v699_v14 = vunpack.c.0.s8 (!%p1813_p6), %v698_v12  ;;  %v731_v36 = vsub.s32 (!%p1813_p6), 0, %v701_v15  ;;  %v735_v37 = vsub.s32 (!%p1813_p6), 1, %v701_v15  ;;  %v932_v62 = vld [vmem:[#allocation9 + $0x3] sm:$0x1] (!%p1813_p6)  ;;  %v1829_v12 = vld [vmem:[#allocation9 + $0x1] ss:$0 sm:$0xff] (!%p1813_p6) }
  0xe5   : > { %v934_v63 = vrot.slane (!%p1813_p6), %v929_v61, 4  ;;  %vm937_vm4 = vcmask (!%p1813_p6), 253952  }
  0xe6   : > { %692 = vadd.xlane.f32.xlu0 (!%p1813_p6), %v691_v4  ;;  %s3156_s9 = smov (!%p1813_p6), %s3155_s21  ;;  %v2105_v5 = vld [vmem:[%s3155_s21] sm:$0xff] (!%p1813_p6)   ;;  %v702_v16 = vsub.s32 (!%p1813_p6), %v699_v14, %v701_v15  ;;  %v732_v40 = vrot.slane (!%p1813_p6), %v681_v38, %v731_v36  ;;  %v736_v41 = vrot.slane (!%p1813_p6), %v681_v38, %v735_v37  ;;  %v744_v42 = vrot.slane (!%p1813_p6), %v683_v39, %v731_v36 }
  0xe7   : > { %863 = vmatpush1.bf16.msra.mxu0 (!%p1813_p6), %v2105_v5  ;;  %v2106_v7 = vld [vmem:[%s3156_s9 + $0x8] sm:$0xff] (!%p1813_p6)   ;;  %v2107_v8 = vld [vmem:[%s3156_s9 + $0x10] sm:$0xff] (!%p1813_p6)   ;;  %v2108_v9 = vld [vmem:[%s3156_s9 + $0x18] sm:$0xff] (!%p1813_p6)   ;;  %v748_v43 = vrot.slane (!%p1813_p6), %v683_v39, %v735_v37 }
  0xe8   : > { %864 = vmatprep.subr.bf16.mxu0 (!%p1813_p6), %v2430_v6  ;;  %v2109_v10 = vld [vmem:[%s3156_s9 + $0x20] sm:$0xff] (!%p1813_p6)   ;;  %v2110_v26 = vld [vmem:[%s3156_s9 + $0x28] sm:$0xff] (!%p1813_p6)   ;;  %v2111_v27 = vld [vmem:[%s3156_s9 + $0x30] sm:$0xff] (!%p1813_p6)   ;;  %v737_v46 = vcombine.low (!%p1813_p6), %v732_v40, %v736_v41 }
  0xe9   : > { %v2112_v28 = vld [vmem:[%s3156_s9 + $0x38] sm:$0xff]   ;;  %v2113_v29 = vld [vmem:[%s3156_s9 + $0x40] sm:$0xff]   ;;  %v2114_v30 = vld [vmem:[%s3156_s9 + $0x48] sm:$0xff]   ;;  %v749_v48 = vcombine.low %v744_v42, %v748_v43 }
  0xea   : > { %v2115_v31 = vld [vmem:[%s3156_s9 + $0x50] sm:$0xff]   ;;  %v2116_v32 = vld [vmem:[%s3156_s9 + $0x58] sm:$0xff]  }
  0xeb   : > { %865 = vmatpush1.bf16.msra.mxu0 %v2106_v7 }
  0xec   : > { %866 = vmatprep.subr.bf16.mxu0 %v2430_v6 }
  0xef   : > { %867 = vmatpush1.bf16.msra.mxu0 %v2107_v8 }
  0xf0   : > { %868 = vmatprep.subr.bf16.mxu0 %v2430_v6 }
  0xf3   : > { %869 = vmatpush1.bf16.msra.mxu0 %v2108_v9 }
  0xf4   : > { %870 = vmatprep.subr.bf16.mxu0 %v2430_v6 }
  0xf7   : > { %871 = vmatpush1.bf16.msra.mxu0 %v2109_v10  ;;  %v1828_v10 = vld [vmem:[#allocation9] ss:$0 sm:$0xff] }
  0xf8   : > { %872 = vmatprep.subr.bf16.mxu0 %v2430_v6 }
  0xfb   : > { %873 = vmatpush1.bf16.msra.mxu0 %v2110_v26 }
  0xfc   : > { %874 = vmatprep.subr.bf16.mxu0 %v2430_v6 }
  0xff   : > { %875 = vmatpush1.bf16.msra.mxu0 %v2111_v27 }
 0x100   : > { %876 = vmatprep.subr.bf16.mxu0 %v2430_v6 }
 0x103   : > { %877 = vmatpush1.bf16.msra.mxu0 %v2112_v28 }
 0x104   : > { %878 = vmatprep.subr.bf16.mxu0 %v2430_v6 }
 0x107   : > { %879 = vmatpush1.bf16.msra.mxu0 %v2113_v29 }
 0x108   : > { %880 = vmatprep.subr.bf16.mxu0 %v2430_v6 }
 0x10b   : > { %881 = vmatpush1.bf16.msra.mxu0 %v2114_v30 }
 0x10c   : > { %882 = vmatprep.subr.bf16.mxu0 %v2430_v6 }
 0x10f   : > { %883 = vmatpush1.bf16.msra.mxu0 %v2115_v31 }
 0x110   : > { %884 = vmatprep.subr.bf16.mxu0 %v2430_v6 }
 0x113   : > { %885 = vmatpush1.bf16.msra.mxu0 %v2116_v32 }
 0x173   : > { %v693_v17 = vpop.xlane.xlu0 %692 }
 0x174   : > { %v695_v18 = vmul.f32 0.0052083335, %v693_v17 }
 0x176   : > { %v703_v19 = vrot.slane %v695_v18, %v702_v16 }
 0x178   : > { %v705_v20 = vsub.f32 %v680_v0, %v703_v19  ;;  %v936_v0 = vadd.f32 %v934_v63, %v932_v62 }
 0x17a   : > { %v706_v21 = vmul.f32 %v705_v20, %v705_v20  ;;  %938 = vst.msk [vmem:[#allocation2 + $0x4] sm:$0x1] %vm937_vm4, %v936_v0 }
 0x17c   : > { %v708_v22 = vcombine.high %v706_v21, %v706_v21  ;;  %v710_v23 = vsel %vm687_vm0, %v706_v21, 0.0 }
 0x17e   : > { %v711_v24 = vsel %vm689_vm1, %v708_v22, 0.0 }
 0x17f   : > { %v712_v25 = vadd.f32 %v711_v24, %v710_v23 }
 0x181   : > { %713 = vadd.xlane.f32.xlu0 %v712_v25 }
 0x20e   : > { %v714_v33 = vpop.xlane.xlu0 %713 }
 0x20f   : > { %v715_v34 = vmul.f32 0.0052083335, %v714_v33 }
 0x211   : > { %v716_v35 = vadd.f32 1e-05, %v715_v34 }
 0x213   : > { %2117 = vrsqrt.f32 %v716_v35 }
 0x21d   : > { %v2118_v44 = vpop.eup %2117 }
 0x21e   : > { %v725_v45 = vrot.slane %v2118_v44, %v702_v16 }
 0x220   : > { %v727_v47 = vmul.f32 %v725_v45, %v705_v20 }
 0x222   : > { %v739_v49 = vmul.f32 %v737_v46, %v727_v47 }
 0x224   : > { %v751_v50 = vadd.f32 %v749_v48, %v739_v49 }
 0x226   : > { %v753_v51 = vcombine.high %v751_v50, %v751_v50  ;;  %v755_v53 = vpack.c.bf16 %v751_v50, %v751_v50 }
 0x228   : > { %v756_v52 = vpack.c.bf16 %v753_v51, %v753_v51 }
 0x22a   : > { %1827 = vmatprep.mubr.msk.bf16.mxu0 %vm858_vm2, %v756_v52 }
 0x22b   : > { %895 = vmatmul.mubr.bf16.vlgmr.msra.gmra.mrb[0].mxu0 %v755_v53 }
 0x2fe   : > { %v896_v55 = vpop.f32.mrb[0].mxu0 }
 0x2ff   : > { %v897_v56 = vadd.f32 %v1814_v54, %v896_v55  ;;  %v898_v57 = vpop.f32.mrb[1].mxu0 }
 0x300   : > { %v899_v58 = vpop.f32.mrb[2].mxu0 }
 0x301   : > { %v900_v59 = vpop.f32.mrb[3].mxu0  ;;  %v905_v60 = vsel %vm904_vm3, %v897_v56, 0.0 }
 0x302   : > { %906 = vadd.xlane.f32.xlu1 %v905_v60 }
 0x38f   : > { %v907_v1 = vpop.xlane.xlu1 %906 }
 0x390   : > { %v909_v2 = vmul.f32 0.03125, %v907_v1 }
 0x392   : > { %v910_v3 = vsub.f32 %v897_v56, %v909_v2 }
 0x394   : > { %v911_v4 = vmul.f32 %v910_v3, %v910_v3 }
 0x396   : > { %v912_v5 = vsel %vm904_vm3, %v911_v4, 0.0 }
 0x397   : > { %913 = vadd.xlane.f32.xlu1 %v912_v5 }
 0x424   : > { %v914_v6 = vpop.xlane.xlu1 %913 }
 0x425   : > { %v915_v7 = vmul.f32 0.03125, %v914_v6 }
 0x427   : > { %v916_v8 = vadd.f32 1e-05, %v915_v7 }
 0x429   : > { %2119 = vrsqrt.f32 %v916_v8 }
 0x433   : > { %v2120_v9 = vpop.eup %2119 }
 0x434   : > { %v918_v11 = vmul.f32 %v2120_v9, %v910_v3 }
 0x436   : > { %v923_v13 = vmul.f32 %v1828_v10, %v918_v11 }
 0x438   : > { %v928_v14 = vadd.f32 %v1829_v12, %v923_v13 }
 0x43a   : > { %v930_v15 = vadd.f32 %v929_v61, %v928_v14 }
 0x43c   : > { %931 = vst.msk [vmem:[#allocation2] sm:$0xf] %vm904_vm3, %v930_v15 }
 0x43d PF: > { %vm946_vm5 = vcmask 258048   ;;  %v2121_v23 = vld [vmem:[%s2849_s5] sm:$0xff]   ;;  %v2432_v24 = vmov 0.0   ;;  %vm2433_vm6 = vmmov 0   ;;  %v2122_v25 = vld [vmem:[%s2849_s5 + $0x8] sm:$0xff]   ;;  %vm995_vm7 = vcmask 261120  }
 0x43e   : > { %1889 = vmatprep.subr.bf16.mxu0 %v2432_v24  ;;  %1893 = vmatprep.mubr.msk.bf16.mxu0 %vm2433_vm6, %v2432_v24  ;;  %v1830_v30 = vld [vmem:[%s2831_s1] ss:$0 sm:$0xff]  ;;  %v1831_v32 = vld [vmem:[%s2831_s1 + $0x1] ss:$0 sm:$0xff]  ;;  %s3157_s28 = sld [smem:[#allocation37_spill]]  ;;  %s2434_s4 = smov 112  }
 0x43f   : > { %1890 = vmatpush3.bf16.msra.mxu0 %v2121_v23  ;;  %1897 = vmatprep.subr.bf16.mxu1 %v2432_v24  ;;  %s2435_s7 = smov 96   ;;  %s2436_s21 = smov 80   ;;  %vm1043_vm8 = vcmask 130048   ;;  %vm1091_vm9 = vcmask 36864   ;;  %vm1110_vm10 = vcmask 1041408   ;;  %vm1111_vm11 = vcmask 1042432  }
 0x440   : > { %1891 = vmatprep.subr.bf16.mxu0 %v2432_v24  ;;  %1899 = vmatprep.mubr.msk.bf16.mxu1 %vm2433_vm6, %v2432_v24  ;;  %s2437_s22 = smov 48   ;;  %s2438_s27 = smov 64   ;;  %v2439_v8 = vmov 65535   ;;  %vm1106_vm12 = vcmask 39936   ;;  %vm1157_vm13 = vcmask 126976   ;;  %v2124_v23 = vld [vmem:[%s2854_s25 + $0x8] sm:$0xff]  }
 0x441   : > { %v1112_v9 = vsel %vm1110_vm10, 4294967295, %v2439_v8  ;;  %s2440_s2 = smov 16   ;;  %vm1274_vm14 = vcmask 258176   ;;  %p1854_p1 = scmp.ne.s32.totalorder %s2407_s19, 1 }
 0x442   : > { %v1113_v11 = vsel %vm1111_vm11, %v1112_v9, 0  ;;  %vm2442_vm15 = vmmov (!%p1854_p1), 0   ;;  %s3161_s29 = sld [smem:[#allocation34_spill]] (!%p1854_p1) }
 0x443   : > { %v2915_v16 = vld [vmem:[#allocation2] sm:$0x1f]  ;;  %1892 = vmatpush3.bf16.msra.mxu0 %v2122_v25 }
 0x444   : > { %v947_v17 = vsel %vm946_vm5, %v2915_v16, 0.0  ;;  %1903 = vmatprep.subr.bf16.mxu0 %v2432_v24  ;;  %s3158_s8 = scalar_lea.vmem %s3157_s28, %s2839_s14 }
 0x445   : > { %948 = vadd.xlane.f32.xlu0 %v947_v17  ;;  %v1832_v36 = vld [vmem:[%s3158_s8] ss:$0 sm:$0xff] }
 0x4d2   : > { %v949_v18 = vpop.xlane.xlu0 %948 }
 0x4d3   : > { %v951_v19 = vmul.f32 0.03125, %v949_v18 }
 0x4d5   : > { %v952_v20 = vsub.f32 %v2915_v16, %v951_v19 }
 0x4d7   : > { %v953_v21 = vmul.f32 %v952_v20, %v952_v20 }
 0x4d9   : > { %v954_v22 = vsel %vm946_vm5, %v953_v21, 0.0 }
 0x4da   : > { %955 = vadd.xlane.f32.xlu0 %v954_v22  ;;  %v2123_v22 = vld [vmem:[%s2854_s25] sm:$0xff]  }
 0x567   : > { %v956_v26 = vpop.xlane.xlu0 %955 }
 0x568   : > { %v957_v27 = vmul.f32 0.03125, %v956_v26 }
 0x56a   : > { %v958_v28 = vadd.f32 1e-05, %v957_v27 }
 0x56c   : > { %2129 = vrsqrt.f32 %v958_v28 }
 0x576   : > { %v2130_v29 = vpop.eup %2129 }
 0x577   : > { %v960_v31 = vmul.f32 %v2130_v29, %v952_v20 }
 0x579   : > { %v965_v33 = vmul.f32 %v1830_v30, %v960_v31 }
 0x57b   : > { %v970_v34 = vadd.f32 %v1831_v32, %v965_v33 }
 0x57d   : > { %v971_v35 = vpack.c.bf16 %v970_v34, %v970_v34 }
 0x57f   : > { %1894 = vmatmul.mubr.msk.bf16.vlgmr.msra.gmra.mrb[0].mxu0 %vm995_vm7, %v971_v35 }
 0x580   : > { %1905 = vmatprep.mubr.msk.bf16.mxu0 %vm2433_vm6, %v2432_v24 }
 0x652   : > { %v1033_v37 = vpop.f32.mrb[0].mxu0 }
 0x653   : > { %v1034_v38 = vadd.f32 %v1832_v36, %v1033_v37  ;;  %v1895_v39 = vpop.f32.mrb[1].mxu0  ;;  %v1840_v36 = vld [vmem:[%s2831_s1 + $0x4] ss:$0 sm:$0xff] }
 0x654   : > { %v1036_v40 = vpop.f32.mrb[2].mxu0 }
 0x655   : > { %v1039_v41 = vpack.c.bf16 %v1034_v38, %v1034_v38  ;;  %v1896_v42 = vpop.f32.mrb[3].mxu0 }
 0x657   : > { %1159 = vrot.lane.b32.xlu0 %v1039_v41, %s2434_s4  ;;  %1041 = vrot.lane.b32.xlu1 %v1039_v41, %s2435_s7 }
 0x65b   : > { %1161 = vrot.lane.b32.xlu1 %v1039_v41, %s2436_s21 }
 0x6c9   : > { %v1042_v43 = vpop.permute.xlu1 %1041  ;;  %v1160_v47 = vpop.permute.xlu0 %1159 }
 0x6ca   : > { %v1048_v44 = vsel %vm1043_vm8, %v1042_v43, 0 }
 0x6cb   : > { %1898 = vmatpush3.bf16.xpose.msra.mxu1 %v1048_v44 }
 0x6cc   : > { %1909 = vmatprep.subr.bf16.mxu1 %v2432_v24 }
 0x6cd   : > { %v1162_v45 = vpop.permute.xlu1 %1161 }
 0x6ce   : > { %v1167_v46 = vsel %vm1043_vm8, %v1162_v45, 0 }
 0x6d2   : > { %1900 = vmatmul.mubr.msk.bf16.vlgmr.msra.gmra.mrb[0].mxu1 %vm1043_vm8, %v1039_v41 }
 0x6d3   : > { %1910 = vmatpush3.bf16.xpose.msra.mxu1 %v1167_v46  ;;  %1911 = vmatprep.mubr.msk.bf16.mxu1 %vm2433_vm6, %v2432_v24 }
 0x6d4   : > { %1921 = vmatprep.subr.bf16.mxu1 %v2432_v24 }
 0x6da   : > { %1912 = vmatmul.mubr.msk.bf16.vlgmr.msra.gmra.mrb[4].mxu1 %vm1043_vm8, %v1160_v47 }
 0x6db   : > { %1925 = vmatprep.mubr.msk.bf16.mxu1 %vm2433_vm6, %v2432_v24  ;;  %1922 = vmatpush3.bf16.msra.mxu1 %v2123_v22  ;;  %v2441_v22 = vmov (!%p1854_p1), 0.0  }
 0x6dc   : > { %1923 = vmatprep.subr.bf16.mxu1 %v2432_v24 }
 0x6df   : > { %1924 = vmatpush3.bf16.msra.mxu1 %v2124_v23 }
 0x6e0   : > { %1937 = vmatprep.subr.bf16.mxu1 %v2432_v24 }
 0x7a5   : > { %v1084_v48 = vpop.f32.mrb[0].mxu1 }
 0x7a6   : > { %v1090_v49 = vmul.f32 0.25, %v1084_v48  ;;  %v1901_v50 = vpop.f32.mrb[1].mxu1 }
 0x7a7   : > { %v1087_v51 = vpop.f32.mrb[2].mxu1  ;;  %v2126_v50 = vld [vmem:[%s2859_s26 + $0x8] sm:$0xff]  }
 0x7a8   : > { %v1902_v52 = vpop.f32.mrb[3].mxu1  ;;  %v1092_v53 = vsel %vm1091_vm9, %v1090_v49, -inf }
 0x7a9   : > { %1093 = vmax.xlane.f32.xlu1 %v1092_v53 }
 0x7ad   : > { %v1203_v54 = vpop.f32.mrb[4].mxu1 }
 0x7ae   : > { %v1209_v55 = vmul.f32 0.25, %v1203_v54  ;;  %v1913_v56 = vpop.f32.mrb[5].mxu1  ;;  %v1844_v54 = vld [vmem:[%s2831_s1 + $0x2] ss:$0 sm:$0xff] }
 0x7af   : > { %v1206_v57 = vpop.f32.mrb[6].mxu1  ;;  %v1845_v56 = vld [vmem:[%s2831_s1 + $0x3] ss:$0 sm:$0xff] }
 0x7b0   : > { %v1914_v58 = vpop.f32.mrb[7].mxu1  ;;  %v1210_v59 = vsel %vm1091_vm9, %v1209_v55, -inf }
 0x7b1   : > { %1211 = vmax.xlane.f32.xlu0 %v1210_v59 }
 0x7c7   : > { %1222 = vrot.lane.b32.xlu0 %v1039_v41, %s2437_s22 }
 0x836   : > { %v1094_v60 = vpop.xlane.xlu1 %1093 }
 0x837   : > { %v1095_v61 = vsub.f32 %v1090_v49, %v1094_v60  ;;  %v2125_v49 = vld [vmem:[%s2859_s26] sm:$0xff]  }
 0x838   : > { %v2127_v60 = vld [vmem:[%s2868_s12] sm:$0xff]  }
 0x839   : > { %v1096_v62 = vmul.f32 1.442695, %v1095_v61  ;;  %v2128_v61 = vld [vmem:[%s2868_s12 + $0x8] sm:$0xff]   ;;  %s3160_s12 = sld [smem:[#allocation33_spill]] (!%p1854_p1) }
 0x83b   : > { %2131 = vpow2.f32 %v1096_v62  ;;  %v1846_v62 = vld [vmem:[%s669_s11] ss:$0 sm:$0xff] }
 0x83e   : > { %v1212_v63 = vpop.xlane.xlu0 %1211 }
 0x83f   : > { %v1213_v0 = vsub.f32 %v1209_v55, %v1212_v63  ;;  %v2144_v23 = vld [vmem:[%s3160_s12 + $0x8] sm:$0xff] (!%p1854_p1)  }
 0x841   : > { %v1214_v1 = vmul.f32 1.442695, %v1213_v0 }
 0x842   : > { %v1223_v15 = vpop.permute.xlu0 %1222 }
 0x843   : > { %2133 = vpow2.f32 %v1214_v1  ;;  %v1228_v18 = vand.u32 %v1223_v15, %v1113_v11 }
 0x845   : > { %v2132_v2 = vpop.eup %2131 }
 0x846   : > { %v1098_v3 = vsel %vm1091_vm9, %v2132_v2, 0.0 }
 0x847   : > { %1099 = vadd.xlane.f32.xlu1 %v1098_v3 }
 0x84d   : > { %v2134_v4 = vpop.eup %2133 }
 0x84e   : > { %v1216_v5 = vsel %vm1091_vm9, %v2134_v4, 0.0 }
 0x84f   : > { %1217 = vadd.xlane.f32.xlu1 %v1216_v5 }
 0x860   : > { %1104 = vrot.lane.b32.xlu1 %v1039_v41, %s2438_s27 }
 0x8d4   : > { %v1100_v6 = vpop.xlane.xlu1 %1099 }
 0x8d5   : > { %2135 = vrcp.f32 %v1100_v6 }
 0x8dc   : > { %v1218_v7 = vpop.xlane.xlu1 %1217 }
 0x8dd   : > { %2137 = vrcp.f32 %v1218_v7 }
 0x8df   : > { %v2136_v10 = vpop.eup %2135 }
 0x8e0   : > { %v1102_v12 = vmul.f32 %v2136_v10, %v2132_v2  ;;  %v1105_v13 = vpop.permute.xlu1 %1104 }
 0x8e1   : > { %v1115_v14 = vand.u32 %v1113_v11, %v1105_v13  ;;  %v1850_v13 = vld [vmem:[%s2831_s1 + $0x5] ss:$0 sm:$0xff] }
 0x8e2   : > { %v1103_v17 = vpack.c.bf16 %v1102_v12, %v1102_v12 }
 0x8e3   : > { %1904 = vmatpush3.bf16.msra.mxu0 %v1115_v14 }
 0x8e4   : > { %1915 = vmatprep.subr.bf16.mxu0 %v2432_v24 }
 0x8e6   : > { %1906 = vmatmul.mubr.msk.bf16.vlgmr.msra.gmra.mrb[4].mxu0 %vm1106_vm12, %v1103_v17 }
 0x8e7   : > { %v2138_v19 = vpop.eup %2137  ;;  %1916 = vmatpush3.bf16.msra.mxu0 %v1228_v18  ;;  %1917 = vmatprep.mubr.msk.bf16.mxu0 %vm2433_vm6, %v2432_v24 }
 0x8e8   : > { %v1220_v20 = vmul.f32 %v2138_v19, %v2134_v4  ;;  %1929 = vmatprep.subr.bf16.mxu0 %v2432_v24 }
 0x8ea   : > { %v1221_v21 = vpack.c.bf16 %v1220_v20, %v1220_v20 }
 0x8ee   : > { %1918 = vmatmul.mubr.msk.bf16.vlgmr.msra.gmra.mrb[8].mxu0 %vm1106_vm12, %v1221_v21  ;;  %v2143_v21 = vld [vmem:[%s3160_s12] sm:$0xff] (!%p1854_p1)  }
 0x8ef   : > { %1933 = vmatprep.mubr.msk.bf16.mxu0 %vm2433_vm6, %v2432_v24  ;;  %1930 = vmatpush3.bf16.msra.mxu0 %v2125_v49 }
 0x8f0   : > { %1931 = vmatprep.subr.bf16.mxu0 %v2432_v24 }
 0x8f3   : > { %1932 = vmatpush3.bf16.msra.mxu0 %v2126_v50 }
 0x8f4   : > { %1945 = vmatprep.subr.bf16.mxu0 (!%p1854_p1), %v2441_v22 }
 0x9b9   : > { %v1151_v25 = vpop.f32.mrb[4].mxu0 }
 0x9ba   : > { %1158 = vst.msk [vmem:[#allocation3] sm:$0x1f] %vm1157_vm13, %v1151_v25  ;;  %v1907_v26 = vpop.f32.mrb[5].mxu0 }
 0x9bb   : > { %v1154_v27 = vpop.f32.mrb[6].mxu0 }
 0x9bc   : > { %v1908_v28 = vpop.f32.mrb[7].mxu0 }
 0x9c1   : > { %v1264_v29 = vpop.f32.mrb[8].mxu0 }
 0x9c2   : > { %1271 = vrot.lane.b32.xlu1 %v1264_v29, %s2440_s2  ;;  %v1919_v30 = vpop.f32.mrb[9].mxu0 }
 0x9c3   : > { %v1267_v31 = vpop.f32.mrb[10].mxu0 }
 0x9c4   : > { %v1920_v32 = vpop.f32.mrb[11].mxu0 }
 0xa34   : > { %v1272_v33 = vpop.permute.xlu1 %1271 }
 0xa35   : > { %1275 = vst.msk [vmem:[#allocation3] sm:$0x1f] %vm1274_vm14, %v1272_v33 }
 0xa3c   : > { %v1276_v34 = vld [vmem:[#allocation3] sm:$0x1f] }
 0xa3d   : > { %v1277_v35 = vpack.c.bf16 %v1276_v34, %v1276_v34  ;;  %v1525_v34 = vld [vmem:[%s3161_s29] sm:$0x1] (!%p1854_p1) }
 0xa3f   : > { %1926 = vmatmul.mubr.msk.bf16.vlgmr.msra.gmra.mrb[8].mxu1 %vm995_vm7, %v1277_v35 }
 0xa40   : > { %1941 = vmatprep.mubr.msk.bf16.mxu1 %vm2433_vm6, %v2432_v24  ;;  %1938 = vmatpush3.bf16.msra.mxu1 %v2127_v60 }
 0xa41   : > { %1939 = vmatprep.subr.bf16.mxu1 %v2432_v24 }
 0xa44   : > { %1940 = vmatpush3.bf16.msra.mxu1 %v2128_v61 }
 0xb12   : > { %v1335_v37 = vpop.f32.mrb[8].mxu1 }
 0xb13   : > { %v1336_v38 = vadd.f32 %v1840_v36, %v1335_v37  ;;  %v1927_v39 = vpop.f32.mrb[9].mxu1 }
 0xb14   : > { %v1338_v40 = vpop.f32.mrb[10].mxu1 }
 0xb15   : > { %v1341_v41 = vadd.f32 %v1336_v38, %v2915_v16  ;;  %v1928_v42 = vpop.f32.mrb[11].mxu1 }
 0xb17   : > { %v1342_v43 = vsel %vm946_vm5, %v1341_v41, 0.0 }
 0xb18   : > { %1343 = vadd.xlane.f32.xlu1 %v1342_v43 }
 0xba5   : > { %v1344_v44 = vpop.xlane.xlu1 %1343 }
 0xba6   : > { %v1345_v45 = vmul.f32 0.03125, %v1344_v44 }
 0xba8   : > { %v1346_v46 = vsub.f32 %v1341_v41, %v1345_v45 }
 0xbaa   : > { %v1347_v47 = vmul.f32 %v1346_v46, %v1346_v46 }
 0xbac   : > { %v1348_v48 = vsel %vm946_vm5, %v1347_v47, 0.0 }
 0xbad   : > { %1349 = vadd.xlane.f32.xlu0 %v1348_v48 }
 0xc3a   : > { %v1350_v16 = vpop.xlane.xlu0 %1349 }
 0xc3b   : > { %v1351_v51 = vmul.f32 0.03125, %v1350_v16 }
 0xc3d   : > { %v1352_v52 = vadd.f32 1e-05, %v1351_v51 }
 0xc3f   : > { %2139 = vrsqrt.f32 %v1352_v52 }
 0xc49   : > { %v2140_v53 = vpop.eup %2139 }
 0xc4a   : > { %v1354_v55 = vmul.f32 %v2140_v53, %v1346_v46 }
 0xc4c   : > { %v1359_v57 = vmul.f32 %v1844_v54, %v1354_v55 }
 0xc4e   : > { %v1364_v58 = vadd.f32 %v1845_v56, %v1359_v57 }
 0xc50   : > { %v1365_v59 = vpack.c.bf16 %v1364_v58, %v1364_v58 }
 0xc52   : > { %1934 = vmatmul.mubr.msk.bf16.vlgmr.msra.gmra.mrb[12].mxu0 %vm995_vm7, %v1365_v59 }
 0xc53   : > { %1946 = vmatpush3.bf16.msra.mxu0 (!%p1854_p1), %v2143_v21  ;;  %1949 = vmatprep.mubr.msk.bf16.mxu0 (!%p1854_p1), %vm2442_vm15, %v2441_v22 }
 0xc54   : > { %1947 = vmatprep.subr.bf16.mxu0 (!%p1854_p1), %v2441_v22 }
 0xc57   : > { %1948 = vmatpush3.bf16.msra.mxu0 (!%p1854_p1), %v2144_v23 }
 0xd25   : > { %v1426_v63 = vpop.f32.mrb[12].mxu0 }
 0xd26   : > { %v1427_v0 = vadd.f32 %v1846_v62, %v1426_v63  ;;  %v1935_v1 = vpop.f32.mrb[13].mxu0 }
 0xd27   : > { %v1429_v2 = vpop.f32.mrb[14].mxu0 }
 0xd28   : > { %v1433_v3 = vmul.f32 0.044715, %v1427_v0  ;;  %v1936_v4 = vpop.f32.mrb[15].mxu0  ;;  %v1432_v24 = vmul.f32 0.5, %v1427_v0 }
 0xd2a   : > { %v1434_v5 = vmul.f32 %v1433_v3, %v1427_v0 }
 0xd2c   : > { %v1435_v6 = vmul.f32 %v1434_v5, %v1427_v0 }
 0xd2e   : > { %v1436_v7 = vadd.f32 %v1435_v6, %v1427_v0 }
 0xd30   : > { %v1437_v8 = vmul.f32 0.7978846, %v1436_v7 }
 0xd32   : > { %2141 = vtanh.f32 %v1437_v8 }
 0xd3c   : > { %v2142_v9 = vpop.eup %2141 }
 0xd3d   : > { %v1439_v10 = vadd.f32 1.0, %v2142_v9 }
 0xd3f   : > { %v1440_v11 = vmul.f32 %v1439_v10, %v1432_v24 }
 0xd41   : > { %v1441_v12 = vpack.c.bf16 %v1440_v11, %v1440_v11 }
 0xd43   : > { %1942 = vmatmul.mubr.msk.bf16.vlgmr.msra.gmra.mrb[12].mxu1 %vm995_vm7, %v1441_v12 }
 0xe15   : > { %1510 = sbr.rel (%p1854_p1) target bundleno = 3843 (0xf03), region = 104 }
 0xe16   : > { %v1499_v14 = vpop.f32.mrb[12].mxu1 }
 0xe17   : > { %v1500_v15 = vadd.f32 %v1850_v13, %v1499_v14  ;;  %v1943_v17 = vpop.f32.mrb[13].mxu1 }
 0xe18   : > { %v1502_v18 = vpop.f32.mrb[14].mxu1 }
 0xe19   : > { %v1505_v19 = vadd.f32 %v1500_v15, %v1341_v41  ;;  %v1944_v20 = vpop.f32.mrb[15].mxu1 }
 0xe1b   : > { %1506 = vst.msk [vmem:[#allocation2] sm:$0x1f] %vm946_vm5, %v1505_v19  ;;  %v1511_v25 = vsel (!%p1854_p1), %vm946_vm5, %v1505_v19, 0.0 }
 0xe1c   : > { %v1512_v26 = vrot.slane %v1511_v25, 4 }
 0xe1e   : > { %v1513_v27 = vadd.f32 %v1512_v26, %v1511_v25 }
 0xe20   : > { %v1514_v28 = vrot.slane %v1513_v27, 2 }
 0xe22   : > { %v1515_v29 = vadd.f32 %v1514_v28, %v1513_v27 }
 0xe24   : > { %v1516_v30 = vrot.slane %v1515_v29, 1 }
 0xe26   : > { %v1517_v31 = vadd.f32 %v1516_v30, %v1515_v29 }
 0xe28   : > { %v1519_v32 = vmul.f32 0.2, %v1517_v31 }
 0xe2a   : > { %v1520_v33 = vpack.c.bf16 %v1519_v32, %v1519_v32 }
 0xe2c   : > { %1950 = vmatmul.mubr.msk.bf16.vlgmr.msra.gmra.mrb[0].mxu0 %vm995_vm7, %v1520_v33 }
 0xeff   : > { %v1575_v35 = vpop.f32.mrb[0].mxu0 }
 0xf00   : > { %v1576_v36 = vadd.f32 %v1575_v35, %v1525_v34  ;;  %v1951_v37 = vpop.f32.mrb[1].mxu0 }
 0xf01   : > { %v1578_v38 = vpop.f32.mrb[2].mxu0 }
 0xf02   : > { %1581 = vst [vmem:[%s648_s0] sm:$0x1] %v1576_v36  ;;  %v1952_v39 = vpop.f32.mrb[3].mxu0 }
 0xf03 PF: > { %s3162_s20 = sld [smem:[#allocation20_spill]]  ;;  %s3163_s5 = sld [smem:[#allocation23_spill]] }
 0xf04   : > { %s3164_s4 = sld [smem:[#allocation42_spill]]  ;;  %s1595_s21 = sshll.u32 %s648_s0, 4  ;;  %s1596_s21 = int_to_ptr.vmem [resolvable:$true] %s1595_s21 }
 0xf05   : > { %s1583_s22 = scalar_lea.sflag [#allocation6], %s2815_s10  ;;  %s2289_s27 = scalar_lea.vmem %s1596_s21, 16 }
 0xf06   : > { %p2290_p9 = scmp.ne.s32.totalorder %s1596_s21, %s2289_s27  ;;  %s2443_s2 = smov [#allocation13]  }
 0xf07   : > { %s2293_s26 = sshll.u32 %s2443_s2, 4  ;;  %s2294_s26 = int_to_ptr.vmem [resolvable:$false] %s2293_s26 }
 0xf08   : > { %s2295_s25 = scalar_lea.vmem %s2294_s26, 32  ;;  %p2296_p0 = scmp.lt.s32.totalorder %s1596_s21, %s2294_s26 }
 0xf09   : > { %s1858_s3 = sshll.u32 %s3162_s20, 4  ;;  %p3165_p7 = scmp.ne.s32.totalorder %s3163_s5, 0 }
 0xf0a   : > { %s3003_s7 = scalar_lea.hbm %s3164_s4, %s1858_s3  ;;  %p2297_p5 = scmp.lt.s32.totalorder %s2295_s25, %s2289_s27 }
 0xf0b   : > { %p2291_p12 = pnand %p2290_p9, %p3165_p7 }
 0xf0c   : > { %p2298_p11 = por %p2297_p5, %p2296_p0 }
 0xf0d   : > { %p2292_p13 = pneg %p2291_p12 }
 0xf0f   : > { %p2299_p8 = pnand %p2298_p11, %p2292_p13 }
 0xf11   : > { %2302 = shalt.err (!%p2299_p8)
}
 0xf12   : > { %s2303_s10 = scalar_lea.hbm %s3003_s7, 16  ;;  %s2307_s14 = scalar_lea.hbm %s3164_s4, 32 }
 0xf13   : > { %p2304_p3 = scmp.ne.s32.totalorder %s3003_s7, %s2303_s10  ;;  %p2308_p10 = scmp.lt.u32.totalorder %s3003_s7, %s3164_s4 }
 0xf14   : > { %p2309_p6 = scmp.lt.u32.totalorder %s2307_s14, %s2303_s10  ;;  %p2311_p9 = scmp.lt.u32.totalorder %s2303_s10, %s3003_s7 }
 0xf15   : > { %p2305_p2 = pnand %p2304_p3, %p3165_p7 }
 0xf16   : > { %p2310_p1 = por %p2309_p6, %p2308_p10 }
 0xf17   : > { %p2306_p4 = pneg %p2305_p2 }
 0xf18   : > { %p2312_p12 = por %p2311_p9, %p2310_p1 }
 0xf1a   : > { %p2313_p13 = pnand %p2312_p12, %p2306_p4 }
 0xf1c   : > { %2316 = shalt.err (!%p2313_p13)
}
 0xf1d   : > { %1969 = dma.vmem_to_hbm [thread:$0]  (%p3165_p7), %s1596_s21, 16, %s3003_s7, %s1583_s22  }
 0xf1e PF: > { %s3166_s1 = sld [smem:[#allocation19_spill]]  ;;  %s3167_s19 = sld [smem:[#allocation24_spill]] }
 0xf1f   : > { %p1999_p0 = scmp.ge.s32.totalorder %s2423_s23, 2 }
 0xf24   : > { %s1607_s6 = sand.u32 1, %s3166_s1   ;;  %p3168_p5 = scmp.ne.s32.totalorder %s3167_s19, 0 }
 0xf25   : > { %s1608_s29 = scalar_lea.sflag [#allocation6], %s1607_s6 }
 0xf26   : > { %p1989_p11 = pnand %p1999_p0, %p3168_p5 }
 0xf28   : > { %2378 = dma.done.wait (!%p1989_p11), %s1608_s29, 16  }
 0xf29   : > { %2380 = vsyncadd (!%p1989_p11), %s1608_s29, 4294967280  ;;  %s32_s23 = sadd.s32 1, %s2423_s23   ;;  %s3169_s20 = sld [smem:[#allocation27_spill]] }
 0xf2a   : > { %p29_p8 = scmp.ge.s32.totalorder %s32_s23, 6   ;;  %s3170_s19 = sld [smem:[#allocation21_spill]] }
 0xf2b   : > { %s3171_s5 = sld [smem:[#allocation22_spill]]  ;;  %s3172_s21 = sld [smem:[#allocation25_spill]] }
 0xf2c   : > { %s3173_s22 = sld [smem:[#allocation26_spill]]  ;;  %s3174_s29 = smov %s2387_s30 }
 0xf2d   : > { %s3175_s30 = smov %s2391_s15  ;;  %s3176_s15 = smov %s2760_s13 }
 0xf2e   : > { %s3177_s16 = smov %s2399_s17  ;;  %s3178_s17 = smov %s2403_s18 }
 0xf2f   : > { %s3179_s18 = smov %s3169_s20  ;;  %31 = sbr.rel (!%p29_p8) target bundleno = 27 (0x1b), region = 171 }
 0xf31   : > { %s3180_s20 = smov %s3171_s5 }
 0xf36   :  { %1612 = vsyncpa [#allocation5], 1 }
 0xf37   :  { %1614 = vsyncpa [#allocation5 + $0x1], 1 }
 0xf38   :  { %1615 = vsyncpa [#allocation8], 1 }
 0xf39   :  { %1616 = vsyncpa [#allocation11], 1 }
 0xf3a   :  { %1617 = vsyncpa [#allocation6], 1 }
 0xf3b   :  { %1619 = vsyncpa [#allocation6 + $0x1], 1 }

</bundles_post_ra>
